<compile_context>
chip_gen: v7x
topology: tpu7x:2x2x1
jax: 0.10.0
libtpu: 0.0.40
codegen_flags: <defaults>
</compile_context>

<pallas_src>
import numpy as np

import jax
import jax.numpy as jnp
from jax.experimental import pallas as pl
from jax.experimental.pallas import tpu as pltpu


BT = 8  # images per grid step (must be a multiple of 8 for clean f32 tiling)


# ------------------------------ fused kernel ------------------------------- #

def _fused_kernel(x_ref, t1_ref, b1_ref, t2_ref, b2_ref,
                  wf1_ref, bf1_ref, wf2_ref, bf2_ref, wf3_ref, bf3_ref,
                  o_ref,
                  acc1, st1, a1, acc2, st2, p2):
    f32, bf16 = jnp.float32, jnp.bfloat16
    bt = o_ref.shape[0]

    # ---- conv1: 5 Toeplitz matmuls (one per kernel row dy), K = w_in*4+ci ----
    # acc1 rows = (y_out, image), lanes = par*128 + xp*8 + c_out  (x_out = 2*xp+par)
    for dy in range(5):
        lhs = x_ref[dy:dy + 28, :, :].reshape(28 * bt, 128).astype(bf16)
        c = jnp.dot(lhs, t1_ref[dy], preferred_element_type=f32).reshape(28, bt, 256)
        if dy == 0:
            acc1[...] = c
        else:
            acc1[...] += c

    # ---- maxpool1 (2x2), then conv1 bias + ReLU (monotone => pool first) ----
    st1[...] = jnp.maximum(acc1[:, :, 0:128], acc1[:, :, 128:256])           # width pairs
    p1 = jnp.maximum(st1[pl.ds(0, 14, 2), :, :], st1[pl.ds(1, 14, 2), :, :])  # height pairs
    a1[...] = jnp.maximum(p1 + b1_ref[...], 0.0)   # (14, bt, 128): lanes xp*8+ci, zeros elsewhere

    # ---- conv2: 5 Toeplitz matmuls, K = xp*8+ci, N = par*128 + x2p*16 + c2 ----
    for dy in range(5):
        lhs = a1[dy:dy + 10, :, :].reshape(10 * bt, 128).astype(bf16)
        c = jnp.dot(lhs, t2_ref[dy], preferred_element_type=f32).reshape(10, bt, 256)
        if dy == 0:
            acc2[...] = c
        else:
            acc2[...] += c

    # ---- maxpool2 (2x2), then conv2 bias + ReLU ----
    st2[...] = jnp.maximum(acc2[:, :, 0:128], acc2[:, :, 128:256])
    q2 = jnp.maximum(st2[pl.ds(0, 5, 2), :, :], st2[pl.ds(1, 5, 2), :, :])
    p2[...] = jnp.maximum(q2 + b2_ref[...], 0.0)   # (5, bt, 128): lanes w*16+c2, zeros elsewhere

    # ---- fc1 (NCHW flatten baked into wf1), then fc2, fc3 ----
    # NOTE: forward() has no ReLU after fc1 / fc2 (relu3/relu4 unused) -- reproduced.
    z1 = jnp.dot(p2[0].astype(bf16), wf1_ref[0], preferred_element_type=f32)
    for h in range(1, 5):
        z1 = z1 + jnp.dot(p2[h].astype(bf16), wf1_ref[h], preferred_element_type=f32)
    z1 = z1 + bf1_ref[...]
    z2 = jnp.dot(z1.astype(bf16), wf2_ref[...], preferred_element_type=f32) + bf2_ref[...]
    z3 = jnp.dot(z2.astype(bf16), wf3_ref[...], preferred_element_type=f32) + bf3_ref[...]
    o_ref[...] = z3                                     # lane-dense (bt, 128) store


# --------------------------- weight preparation ----------------------------- #

def prepare_params(p):
    """Host-side one-off repack of PyTorch-layout params into Toeplitz/padded
    kernel weights.  Called OUTSIDE the jitted forward and cached (review item)."""
    pn = {k: np.asarray(v, np.float32) for k, v in p.items()}
    w1, b1 = pn["w1"], pn["b1"]            # (6,3,5,5) OIHW, (6,)
    w2, b2 = pn["w2"], pn["b2"]            # (16,6,5,5), (16,)

    # conv1 Toeplitz: T1[dy, w_in*4+ci, par*128 + xp*8 + co] = w1[co,ci,dy,w_in-x_out]
    t1 = np.zeros((5, 128, 256), np.float32)
    for dy in range(5):
        for kx in range(5):
            for xo in range(28):                       # conv1 output column
                xp, par = xo // 2, xo % 2
                w_in = xo + kx                         # input column (< 32)
                for ci in range(3):
                    for co in range(6):
                        t1[dy, w_in * 4 + ci, par * 128 + xp * 8 + co] = w1[co, ci, dy, kx]
    b1l = np.zeros((1, 128), np.float32)
    for g in range(14):
        b1l[0, g * 8:g * 8 + 6] = b1

    # conv2 Toeplitz: T2[dy, xp*8+ci, par*128 + x2p*16 + co] = w2[co,ci,dy,xp-x2]
    t2 = np.zeros((5, 128, 256), np.float32)
    for dy in range(5):
        for kx in range(5):
            for x2 in range(10):                       # conv2 output column
                x2p, par = x2 // 2, x2 % 2
                xp_in = x2 + kx                        # pooled-1 input column (< 14)
                for ci in range(6):
                    for co in range(16):
                        t2[dy, xp_in * 8 + ci, par * 128 + x2p * 16 + co] = w2[co, ci, dy, kx]
    b2l = np.zeros((1, 128), np.float32)
    for g in range(5):
        b2l[0, g * 16:g * 16 + 16] = b2

    # fc1: rows indexed by PyTorch NCHW flatten f = c*25 + h*5 + w; bake the
    # permutation in as 5 per-row matrices Wf1[h, w*16+c, n].
    fc1_w = pn["fc1_w"]                                # (400, 120), y = x @ W + b
    wf1 = np.zeros((5, 128, 128), np.float32)
    for h in range(5):
        for w in range(5):
            for c in range(16):
                wf1[h, w * 16 + c, :120] = fc1_w[c * 25 + h * 5 + w]
    bf1 = np.zeros((1, 128), np.float32); bf1[0, :120] = pn["fc1_b"]

    wf2 = np.zeros((128, 128), np.float32); wf2[:120, :84] = pn["fc2_w"]
    bf2 = np.zeros((1, 128), np.float32); bf2[0, :84] = pn["fc2_b"]
    wf3 = np.zeros((128, 128), np.float32); wf3[:84, :10] = pn["fc3_w"]
    bf3 = np.zeros((1, 128), np.float32); bf3[0, :10] = pn["fc3_b"]

    bf16 = jnp.bfloat16
    return dict(
        t1=jnp.asarray(t1, bf16), b1=jnp.asarray(b1l),
        t2=jnp.asarray(t2, bf16), b2=jnp.asarray(b2l),
        wf1=jnp.asarray(wf1, bf16), bf1=jnp.asarray(bf1),
        wf2=jnp.asarray(wf2, bf16), bf2=jnp.asarray(bf2),
        wf3=jnp.asarray(wf3, bf16), bf3=jnp.asarray(bf3),
    )


# ------------------------------ pallas wrapper ------------------------------ #

def _forward_padded(packed, xk, bt):
    bpad = xk.shape[1]
    grid_spec = pltpu.PrefetchScalarGridSpec(
        num_scalar_prefetch=0,
        grid=(bpad // bt,),                                   # BT images per step
        in_specs=[
            pl.BlockSpec((32, bt, 128), lambda i: (0, i, 0)),  # input slab (H, B, W*4+C)
            pl.BlockSpec((5, 128, 256), lambda i: (0, 0, 0)),  # conv1 Toeplitz
            pl.BlockSpec((1, 128), lambda i: (0, 0)),          # conv1 bias (lane layout)
            pl.BlockSpec((5, 128, 256), lambda i: (0, 0, 0)),  # conv2 Toeplitz
            pl.BlockSpec((1, 128), lambda i: (0, 0)),          # conv2 bias
            pl.BlockSpec((5, 128, 128), lambda i: (0, 0, 0)),  # fc1 (per pooled row h)
            pl.BlockSpec((1, 128), lambda i: (0, 0)),          # fc1 bias
            pl.BlockSpec((128, 128), lambda i: (0, 0)),        # fc2
            pl.BlockSpec((1, 128), lambda i: (0, 0)),          # fc2 bias
            pl.BlockSpec((128, 128), lambda i: (0, 0)),        # fc3
            pl.BlockSpec((1, 128), lambda i: (0, 0)),          # fc3 bias
        ],
        out_specs=pl.BlockSpec((bt, 128), lambda i: (i, 0)),
        scratch_shapes=[
            pltpu.VMEM((28, bt, 256), jnp.float32),  # conv1 accumulator
            pltpu.VMEM((28, bt, 128), jnp.float32),  # conv1 width-pooled
            pltpu.VMEM((14, bt, 128), jnp.float32),  # pool1+bias+relu (conv2 input)
            pltpu.VMEM((10, bt, 256), jnp.float32),  # conv2 accumulator
            pltpu.VMEM((10, bt, 128), jnp.float32),  # conv2 width-pooled
            pltpu.VMEM((5, bt, 128), jnp.float32),   # pool2+bias+relu (fc1 input)
        ],
    )
    return pl.pallas_call(
        _fused_kernel,
        out_shape=jax.ShapeDtypeStruct((bpad, 128), jnp.float32),
        grid_spec=grid_spec,
        compiler_params=pltpu.CompilerParams(dimension_semantics=("parallel",)),
    )(xk, packed["t1"], packed["b1"], packed["t2"], packed["b2"],
      packed["wf1"], packed["bf1"], packed["wf2"], packed["bf2"],
      packed["wf3"], packed["bf3"])


def super_simple_net(packed, x_nchw, bt=BT):
    """Forward pass.  `packed` must come from prepare_params (cached, un-jitted)."""
    assert bt % 8 == 0
    b = x_nchw.shape[0]
    bpad = ((b + bt - 1) // bt) * bt
    # NCHW -> (H, B, W, C), pad C 3->4, flatten (W, C) onto 128 lanes.
    xk = jnp.transpose(x_nchw, (2, 0, 3, 1))
    xk = jnp.pad(xk, ((0, 0), (0, bpad - b), (0, 0), (0, 1)))
    xk = xk.reshape(32, bpad, 128).astype(jnp.float32)
    out = _forward_padded(packed, xk, bt)                 # (bpad, 128)
    return out[:b, :10]                                   # real 10 logits


# --------------------------------- model ------------------------------------ #

def init_params():
    """Deterministic synthetic parameters with the shapes implied by __init__."""
    keys = jax.random.split(jax.random.PRNGKey(42), 10)

    def rn(key, shape, scale):
        return jax.random.normal(key, shape, dtype=jnp.float32) * scale

    return {
        "w1": rn(keys[0], (6, 3, 5, 5), 0.10),     # conv1 weight (OIHW)
        "b1": rn(keys[1], (6,), 0.10),
        "w2": rn(keys[2], (16, 6, 5, 5), 0.05),    # conv2 weight (OIHW)
        "b2": rn(keys[3], (16,), 0.05),
        "fc1_w": rn(keys[4], (400, 120), 0.05),    # stored (in, out); y = x @ W + b
        "fc1_b": rn(keys[5], (120,), 0.05),
        "fc2_w": rn(keys[6], (120, 84), 0.05),
        "fc2_b": rn(keys[7], (84,), 0.05),
        "fc3_w": rn(keys[8], (84, 10), 0.05),
        "fc3_b": rn(keys[9], (10,), 0.05),
    }


def reference_forward(params, x):
    """Pure-JAX f32 reference with the same bf16 rounding points as the kernel."""
    f32 = jnp.float32
    q = lambda a: a.astype(jnp.bfloat16).astype(f32)

    def pool2x2(y):
        n, c, h, w = y.shape
        return jnp.max(y.reshape(n, c, h // 2, 2, w // 2, 2), axis=(3, 5))

    dn = ("NCHW", "OIHW", "NCHW")
    y = jax.lax.conv_general_dilated(q(x), q(params["w1"]), (1, 1), "VALID",
                                     dimension_numbers=dn)
    y = pool2x2(jax.nn.relu(y + params["b1"][None, :, None, None]))
    y = jax.lax.conv_general_dilated(q(y), q(params["w2"]), (1, 1), "VALID",
                                     dimension_numbers=dn)
    y = pool2x2(jax.nn.relu(y + params["b2"][None, :, None, None]))
    y = q(y).reshape(y.shape[0], -1)                      # NCHW flatten
    z = y @ q(params["fc1_w"]) + params["fc1_b"]          # no ReLU (matches forward)
    z = q(z) @ q(params["fc2_w"]) + params["fc2_b"]       # no ReLU (matches forward)
    z = q(z) @ q(params["fc3_w"]) + params["fc3_b"]
    return z


if __name__ == "__main__":
    params = init_params()
    packed = prepare_params(params)   # hoisted out of the jitted path & cached

    # Batch of 16 -> 2 grid steps of BT=8 (even grid => both v7x TensorCores busy).
    x = jax.random.normal(jax.random.PRNGKey(0), (16, 3, 32, 32), dtype=jnp.float32)

    fwd = jax.jit(super_simple_net)
    out = jax.block_until_ready(fwd(packed, x))
    assert out.shape == (16, 10), out.shape
    assert bool(jnp.all(jnp.isfinite(out)))

    # Tolerance-asserted pure-JAX reference (review's correctness ask).
    ref = reference_forward(params, x)
    err = float(jnp.max(jnp.abs(out - ref)))
    assert err < 2e-2, f"kernel vs reference max abs err {err}"

    print("KERNEL_OK")
</pallas_src>

<mosaic_0001>
module attributes {stable_mosaic.version = 11 : i64} {
  func.func @_fused_kernel(%arg0: i32, %arg1: memref<32x8x128xf32, #tpu.memory_space<vmem>>, %arg2: memref<5x128x256xbf16, #tpu.memory_space<vmem>>, %arg3: memref<1x128xf32, #tpu.memory_space<vmem>>, %arg4: memref<5x128x256xbf16, #tpu.memory_space<vmem>>, %arg5: memref<1x128xf32, #tpu.memory_space<vmem>>, %arg6: memref<5x128x128xbf16, #tpu.memory_space<vmem>>, %arg7: memref<1x128xf32, #tpu.memory_space<vmem>>, %arg8: memref<128x128xbf16, #tpu.memory_space<vmem>>, %arg9: memref<1x128xf32, #tpu.memory_space<vmem>>, %arg10: memref<128x128xbf16, #tpu.memory_space<vmem>>, %arg11: memref<1x128xf32, #tpu.memory_space<vmem>>, %arg12: memref<8x128xf32, #tpu.memory_space<vmem>>, %arg13: memref<28x8x256xf32, #tpu.memory_space<vmem>>, %arg14: memref<28x8x128xf32, #tpu.memory_space<vmem>>, %arg15: memref<14x8x128xf32, #tpu.memory_space<vmem>>, %arg16: memref<10x8x256xf32, #tpu.memory_space<vmem>>, %arg17: memref<10x8x128xf32, #tpu.memory_space<vmem>>, %arg18: memref<5x8x128xf32, #tpu.memory_space<vmem>>) attributes {dimension_semantics = [#tpu.dimension_semantics<parallel>], iteration_bounds = array<i64: 2>, scalar_prefetch = 0 : i64, scratch_operands = 6 : i64, tpu.core_type = #tpu.core_type<tc>, window_params = [{transform_indices = @transform_0, window_bounds = array<i64: 32, 8, 128>}, {pipeline_mode = #tpu.pipeline_mode<synchronous>, transform_indices = @transform_1, window_bounds = array<i64: 5, 128, 256>}, {pipeline_mode = #tpu.pipeline_mode<synchronous>, transform_indices = @transform_2, window_bounds = array<i64: 1, 128>}, {pipeline_mode = #tpu.pipeline_mode<synchronous>, transform_indices = @transform_3, window_bounds = array<i64: 5, 128, 256>}, {pipeline_mode = #tpu.pipeline_mode<synchronous>, transform_indices = @transform_4, window_bounds = array<i64: 1, 128>}, {pipeline_mode = #tpu.pipeline_mode<synchronous>, transform_indices = @transform_5, window_bounds = array<i64: 5, 128, 128>}, {pipeline_mode = #tpu.pipeline_mode<synchronous>, transform_indices = @transform_6, window_bounds = array<i64: 1, 128>}, {pipeline_mode = #tpu.pipeline_mode<synchronous>, transform_indices = @transform_7, window_bounds = array<i64: 128, 128>}, {pipeline_mode = #tpu.pipeline_mode<synchronous>, transform_indices = @transform_8, window_bounds = array<i64: 1, 128>}, {pipeline_mode = #tpu.pipeline_mode<synchronous>, transform_indices = @transform_9, window_bounds = array<i64: 128, 128>}, {pipeline_mode = #tpu.pipeline_mode<synchronous>, transform_indices = @transform_10, window_bounds = array<i64: 1, 128>}, {transform_indices = @transform_11, window_bounds = array<i64: 8, 128>}]} {
    %c0 = arith.constant 0 : index
    %c0_0 = arith.constant 0 : index
    %c0_1 = arith.constant 0 : index
    %0 = vector.load %arg1[%c0, %c0_0, %c0_1] : memref<32x8x128xf32, #tpu.memory_space<vmem>>, vector<28x8x128xf32>
    %1 = vector.shape_cast %0 : vector<28x8x128xf32> to vector<224x128xf32>
    %2 = arith.truncf %1 : vector<224x128xf32> to vector<224x128xbf16>
    %c0_2 = arith.constant 0 : index
    %c0_3 = arith.constant 0 : index
    %c0_4 = arith.constant 0 : index
    %3 = vector.load %arg2[%c0_2, %c0_3, %c0_4] : memref<5x128x256xbf16, #tpu.memory_space<vmem>>, vector<1x128x256xbf16>
    %4 = vector.shape_cast %3 : vector<1x128x256xbf16> to vector<128x256xbf16>
    %cst = arith.constant dense<0.000000e+00> : vector<224x256xf32>
    %5 = tpu.matmul %2, %4, %cst {dimension_numbers = #tpu.dot_dimension_numbers<[1], [0], [0], [1], [0, 0, 1, 1], [], []>} : vector<224x128xbf16>, vector<128x256xbf16>, vector<224x256xf32> -> vector<224x256xf32>
    %6 = vector.shape_cast %5 : vector<224x256xf32> to vector<28x8x256xf32>
    %c0_5 = arith.constant 0 : index
    %c0_6 = arith.constant 0 : index
    %c0_7 = arith.constant 0 : index
    %7 = vector.load %arg13[%c0_5, %c0_6, %c0_7] : memref<28x8x256xf32, #tpu.memory_space<vmem>>, vector<28x8x256xf32>
    tpu.vector_store %arg13[%c0_5, %c0_6, %c0_7], %6 {strides = array<i32>} : memref<28x8x256xf32, #tpu.memory_space<vmem>>, vector<28x8x256xf32>,
    %c1 = arith.constant 1 : index
    %c0_8 = arith.constant 0 : index
    %c0_9 = arith.constant 0 : index
    %8 = vector.load %arg1[%c1, %c0_8, %c0_9] : memref<32x8x128xf32, #tpu.memory_space<vmem>>, vector<28x8x128xf32>
    %9 = vector.shape_cast %8 : vector<28x8x128xf32> to vector<224x128xf32>
    %10 = arith.truncf %9 : vector<224x128xf32> to vector<224x128xbf16>
    %c1_10 = arith.constant 1 : index
    %c0_11 = arith.constant 0 : index
    %c0_12 = arith.constant 0 : index
    %11 = vector.load %arg2[%c1_10, %c0_11, %c0_12] : memref<5x128x256xbf16, #tpu.memory_space<vmem>>, vector<1x128x256xbf16>
    %12 = vector.shape_cast %11 : vector<1x128x256xbf16> to vector<128x256xbf16>
    %cst_13 = arith.constant dense<0.000000e+00> : vector<224x256xf32>
    %13 = tpu.matmul %10, %12, %cst_13 {dimension_numbers = #tpu.dot_dimension_numbers<[1], [0], [0], [1], [0, 0, 1, 1], [], []>} : vector<224x128xbf16>, vector<128x256xbf16>, vector<224x256xf32> -> vector<224x256xf32>
    %14 = vector.shape_cast %13 : vector<224x256xf32> to vector<28x8x256xf32>
    %c0_14 = arith.constant 0 : index
    %c0_15 = arith.constant 0 : index
    %c0_16 = arith.constant 0 : index
    %15 = vector.load %arg13[%c0_14, %c0_15, %c0_16] : memref<28x8x256xf32, #tpu.memory_space<vmem>>, vector<28x8x256xf32>
    %16 = arith.addf %15, %14 : vector<28x8x256xf32>
    %c0_17 = arith.constant 0 : index
    %c0_18 = arith.constant 0 : index
    %c0_19 = arith.constant 0 : index
    %17 = vector.load %arg13[%c0_17, %c0_18, %c0_19] : memref<28x8x256xf32, #tpu.memory_space<vmem>>, vector<28x8x256xf32>
    tpu.vector_store %arg13[%c0_17, %c0_18, %c0_19], %16 {strides = array<i32>} : memref<28x8x256xf32, #tpu.memory_space<vmem>>, vector<28x8x256xf32>,
    %c2 = arith.constant 2 : index
    %c0_20 = arith.constant 0 : index
    %c0_21 = arith.constant 0 : index
    %18 = vector.load %arg1[%c2, %c0_20, %c0_21] : memref<32x8x128xf32, #tpu.memory_space<vmem>>, vector<28x8x128xf32>
    %19 = vector.shape_cast %18 : vector<28x8x128xf32> to vector<224x128xf32>
    %20 = arith.truncf %19 : vector<224x128xf32> to vector<224x128xbf16>
    %c2_22 = arith.constant 2 : index
    %c0_23 = arith.constant 0 : index
    %c0_24 = arith.constant 0 : index
    %21 = vector.load %arg2[%c2_22, %c0_23, %c0_24] : memref<5x128x256xbf16, #tpu.memory_space<vmem>>, vector<1x128x256xbf16>
    %22 = vector.shape_cast %21 : vector<1x128x256xbf16> to vector<128x256xbf16>
    %cst_25 = arith.constant dense<0.000000e+00> : vector<224x256xf32>
    %23 = tpu.matmul %20, %22, %cst_25 {dimension_numbers = #tpu.dot_dimension_numbers<[1], [0], [0], [1], [0, 0, 1, 1], [], []>} : vector<224x128xbf16>, vector<128x256xbf16>, vector<224x256xf32> -> vector<224x256xf32>
    %24 = vector.shape_cast %23 : vector<224x256xf32> to vector<28x8x256xf32>
    %c0_26 = arith.constant 0 : index
    %c0_27 = arith.constant 0 : index
    %c0_28 = arith.constant 0 : index
    %25 = vector.load %arg13[%c0_26, %c0_27, %c0_28] : memref<28x8x256xf32, #tpu.memory_space<vmem>>, vector<28x8x256xf32>
    %26 = arith.addf %25, %24 : vector<28x8x256xf32>
    %c0_29 = arith.constant 0 : index
    %c0_30 = arith.constant 0 : index
    %c0_31 = arith.constant 0 : index
    %27 = vector.load %arg13[%c0_29, %c0_30, %c0_31] : memref<28x8x256xf32, #tpu.memory_space<vmem>>, vector<28x8x256xf32>
    tpu.vector_store %arg13[%c0_29, %c0_30, %c0_31], %26 {strides = array<i32>} : memref<28x8x256xf32, #tpu.memory_space<vmem>>, vector<28x8x256xf32>,
    %c3 = arith.constant 3 : index
    %c0_32 = arith.constant 0 : index
    %c0_33 = arith.constant 0 : index
    %28 = vector.load %arg1[%c3, %c0_32, %c0_33] : memref<32x8x128xf32, #tpu.memory_space<vmem>>, vector<28x8x128xf32>
    %29 = vector.shape_cast %28 : vector<28x8x128xf32> to vector<224x128xf32>
    %30 = arith.truncf %29 : vector<224x128xf32> to vector<224x128xbf16>
    %c3_34 = arith.constant 3 : index
    %c0_35 = arith.constant 0 : index
    %c0_36 = arith.constant 0 : index
    %31 = vector.load %arg2[%c3_34, %c0_35, %c0_36] : memref<5x128x256xbf16, #tpu.memory_space<vmem>>, vector<1x128x256xbf16>
    %32 = vector.shape_cast %31 : vector<1x128x256xbf16> to vector<128x256xbf16>
    %cst_37 = arith.constant dense<0.000000e+00> : vector<224x256xf32>
    %33 = tpu.matmul %30, %32, %cst_37 {dimension_numbers = #tpu.dot_dimension_numbers<[1], [0], [0], [1], [0, 0, 1, 1], [], []>} : vector<224x128xbf16>, vector<128x256xbf16>, vector<224x256xf32> -> vector<224x256xf32>
    %34 = vector.shape_cast %33 : vector<224x256xf32> to vector<28x8x256xf32>
    %c0_38 = arith.constant 0 : index
    %c0_39 = arith.constant 0 : index
    %c0_40 = arith.constant 0 : index
    %35 = vector.load %arg13[%c0_38, %c0_39, %c0_40] : memref<28x8x256xf32, #tpu.memory_space<vmem>>, vector<28x8x256xf32>
    %36 = arith.addf %35, %34 : vector<28x8x256xf32>
    %c0_41 = arith.constant 0 : index
    %c0_42 = arith.constant 0 : index
    %c0_43 = arith.constant 0 : index
    %37 = vector.load %arg13[%c0_41, %c0_42, %c0_43] : memref<28x8x256xf32, #tpu.memory_space<vmem>>, vector<28x8x256xf32>
    tpu.vector_store %arg13[%c0_41, %c0_42, %c0_43], %36 {strides = array<i32>} : memref<28x8x256xf32, #tpu.memory_space<vmem>>, vector<28x8x256xf32>,
    %c4 = arith.constant 4 : index
    %c0_44 = arith.constant 0 : index
    %c0_45 = arith.constant 0 : index
    %38 = vector.load %arg1[%c4, %c0_44, %c0_45] : memref<32x8x128xf32, #tpu.memory_space<vmem>>, vector<28x8x128xf32>
    %39 = vector.shape_cast %38 : vector<28x8x128xf32> to vector<224x128xf32>
    %40 = arith.truncf %39 : vector<224x128xf32> to vector<224x128xbf16>
    %c4_46 = arith.constant 4 : index
    %c0_47 = arith.constant 0 : index
    %c0_48 = arith.constant 0 : index
    %41 = vector.load %arg2[%c4_46, %c0_47, %c0_48] : memref<5x128x256xbf16, #tpu.memory_space<vmem>>, vector<1x128x256xbf16>
    %42 = vector.shape_cast %41 : vector<1x128x256xbf16> to vector<128x256xbf16>
    %cst_49 = arith.constant dense<0.000000e+00> : vector<224x256xf32>
    %43 = tpu.matmul %40, %42, %cst_49 {dimension_numbers = #tpu.dot_dimension_numbers<[1], [0], [0], [1], [0, 0, 1, 1], [], []>} : vector<224x128xbf16>, vector<128x256xbf16>, vector<224x256xf32> -> vector<224x256xf32>
    %44 = vector.shape_cast %43 : vector<224x256xf32> to vector<28x8x256xf32>
    %c0_50 = arith.constant 0 : index
    %c0_51 = arith.constant 0 : index
    %c0_52 = arith.constant 0 : index
    %45 = vector.load %arg13[%c0_50, %c0_51, %c0_52] : memref<28x8x256xf32, #tpu.memory_space<vmem>>, vector<28x8x256xf32>
    %46 = arith.addf %45, %44 : vector<28x8x256xf32>
    %c0_53 = arith.constant 0 : index
    %c0_54 = arith.constant 0 : index
    %c0_55 = arith.constant 0 : index
    %47 = vector.load %arg13[%c0_53, %c0_54, %c0_55] : memref<28x8x256xf32, #tpu.memory_space<vmem>>, vector<28x8x256xf32>
    tpu.vector_store %arg13[%c0_53, %c0_54, %c0_55], %46 {strides = array<i32>} : memref<28x8x256xf32, #tpu.memory_space<vmem>>, vector<28x8x256xf32>,
    %c0_56 = arith.constant 0 : index
    %c0_57 = arith.constant 0 : index
    %c0_58 = arith.constant 0 : index
    %48 = vector.load %arg13[%c0_56, %c0_57, %c0_58] : memref<28x8x256xf32, #tpu.memory_space<vmem>>, vector<28x8x128xf32>
    %c0_59 = arith.constant 0 : index
    %c0_60 = arith.constant 0 : index
    %c128 = arith.constant 128 : index
    %49 = vector.load %arg13[%c0_59, %c0_60, %c128] : memref<28x8x256xf32, #tpu.memory_space<vmem>>, vector<28x8x128xf32>
    %50 = arith.maximumf %48, %49 : vector<28x8x128xf32>
    %c0_61 = arith.constant 0 : index
    %c0_62 = arith.constant 0 : index
    %c0_63 = arith.constant 0 : index
    %51 = vector.load %arg14[%c0_61, %c0_62, %c0_63] : memref<28x8x128xf32, #tpu.memory_space<vmem>>, vector<28x8x128xf32>
    tpu.vector_store %arg14[%c0_61, %c0_62, %c0_63], %50 {strides = array<i32>} : memref<28x8x128xf32, #tpu.memory_space<vmem>>, vector<28x8x128xf32>,
    %c0_64 = arith.constant 0 : index
    %c0_65 = arith.constant 0 : index
    %c0_66 = arith.constant 0 : index
    %52 = tpu.strided_load %arg14[%c0_64, %c0_65, %c0_66] {strides = array<i32: 2, 1, 1>} : memref<28x8x128xf32, #tpu.memory_space<vmem>>, vector<14x8x128xf32>
    %c1_67 = arith.constant 1 : index
    %c0_68 = arith.constant 0 : index
    %c0_69 = arith.constant 0 : index
    %53 = tpu.strided_load %arg14[%c1_67, %c0_68, %c0_69] {strides = array<i32: 2, 1, 1>} : memref<28x8x128xf32, #tpu.memory_space<vmem>>, vector<14x8x128xf32>
    %54 = arith.maximumf %52, %53 : vector<14x8x128xf32>
    %c0_70 = arith.constant 0 : index
    %c0_71 = arith.constant 0 : index
    %55 = vector.load %arg3[%c0_70, %c0_71] : memref<1x128xf32, #tpu.memory_space<vmem>>, vector<1x128xf32>
    %56 = vector.shape_cast %55 : vector<1x128xf32> to vector<1x1x128xf32>
    %57 = vector.broadcast %56 : vector<1x1x128xf32> to vector<14x8x128xf32>
    %58 = arith.addf %54, %57 : vector<14x8x128xf32>
    %cst_72 = arith.constant 0.000000e+00 : f32
    %59 = vector.broadcast %cst_72 : f32 to vector<14x8x128xf32>
    %60 = arith.maximumf %58, %59 : vector<14x8x128xf32>
    %c0_73 = arith.constant 0 : index
    %c0_74 = arith.constant 0 : index
    %c0_75 = arith.constant 0 : index
    %61 = vector.load %arg15[%c0_73, %c0_74, %c0_75] : memref<14x8x128xf32, #tpu.memory_space<vmem>>, vector<14x8x128xf32>
    tpu.vector_store %arg15[%c0_73, %c0_74, %c0_75], %60 {strides = array<i32>} : memref<14x8x128xf32, #tpu.memory_space<vmem>>, vector<14x8x128xf32>,
    %c0_76 = arith.constant 0 : index
    %c0_77 = arith.constant 0 : index
    %c0_78 = arith.constant 0 : index
    %62 = vector.load %arg15[%c0_76, %c0_77, %c0_78] : memref<14x8x128xf32, #tpu.memory_space<vmem>>, vector<10x8x128xf32>
    %63 = vector.shape_cast %62 : vector<10x8x128xf32> to vector<80x128xf32>
    %64 = arith.truncf %63 : vector<80x128xf32> to vector<80x128xbf16>
    %c0_79 = arith.constant 0 : index
    %c0_80 = arith.constant 0 : index
    %c0_81 = arith.constant 0 : index
    %65 = vector.load %arg4[%c0_79, %c0_80, %c0_81] : memref<5x128x256xbf16, #tpu.memory_space<vmem>>, vector<1x128x256xbf16>
    %66 = vector.shape_cast %65 : vector<1x128x256xbf16> to vector<128x256xbf16>
    %cst_82 = arith.constant dense<0.000000e+00> : vector<80x256xf32>
    %67 = tpu.matmul %64, %66, %cst_82 {dimension_numbers = #tpu.dot_dimension_numbers<[1], [0], [0], [1], [0, 0, 1, 1], [], []>} : vector<80x128xbf16>, vector<128x256xbf16>, vector<80x256xf32> -> vector<80x256xf32>
    %68 = vector.shape_cast %67 : vector<80x256xf32> to vector<10x8x256xf32>
    %c0_83 = arith.constant 0 : index
    %c0_84 = arith.constant 0 : index
    %c0_85 = arith.constant 0 : index
    %69 = vector.load %arg16[%c0_83, %c0_84, %c0_85] : memref<10x8x256xf32, #tpu.memory_space<vmem>>, vector<10x8x256xf32>
    tpu.vector_store %arg16[%c0_83, %c0_84, %c0_85], %68 {strides = array<i32>} : memref<10x8x256xf32, #tpu.memory_space<vmem>>, vector<10x8x256xf32>,
    %c1_86 = arith.constant 1 : index
    %c0_87 = arith.constant 0 : index
    %c0_88 = arith.constant 0 : index
    %70 = vector.load %arg15[%c1_86, %c0_87, %c0_88] : memref<14x8x128xf32, #tpu.memory_space<vmem>>, vector<10x8x128xf32>
    %71 = vector.shape_cast %70 : vector<10x8x128xf32> to vector<80x128xf32>
    %72 = arith.truncf %71 : vector<80x128xf32> to vector<80x128xbf16>
    %c1_89 = arith.constant 1 : index
    %c0_90 = arith.constant 0 : index
    %c0_91 = arith.constant 0 : index
    %73 = vector.load %arg4[%c1_89, %c0_90, %c0_91] : memref<5x128x256xbf16, #tpu.memory_space<vmem>>, vector<1x128x256xbf16>
    %74 = vector.shape_cast %73 : vector<1x128x256xbf16> to vector<128x256xbf16>
    %cst_92 = arith.constant dense<0.000000e+00> : vector<80x256xf32>
    %75 = tpu.matmul %72, %74, %cst_92 {dimension_numbers = #tpu.dot_dimension_numbers<[1], [0], [0], [1], [0, 0, 1, 1], [], []>} : vector<80x128xbf16>, vector<128x256xbf16>, vector<80x256xf32> -> vector<80x256xf32>
    %76 = vector.shape_cast %75 : vector<80x256xf32> to vector<10x8x256xf32>
    %c0_93 = arith.constant 0 : index
    %c0_94 = arith.constant 0 : index
    %c0_95 = arith.constant 0 : index
    %77 = vector.load %arg16[%c0_93, %c0_94, %c0_95] : memref<10x8x256xf32, #tpu.memory_space<vmem>>, vector<10x8x256xf32>
    %78 = arith.addf %77, %76 : vector<10x8x256xf32>
    %c0_96 = arith.constant 0 : index
    %c0_97 = arith.constant 0 : index
    %c0_98 = arith.constant 0 : index
    %79 = vector.load %arg16[%c0_96, %c0_97, %c0_98] : memref<10x8x256xf32, #tpu.memory_space<vmem>>, vector<10x8x256xf32>
    tpu.vector_store %arg16[%c0_96, %c0_97, %c0_98], %78 {strides = array<i32>} : memref<10x8x256xf32, #tpu.memory_space<vmem>>, vector<10x8x256xf32>,
    %c2_99 = arith.constant 2 : index
    %c0_100 = arith.constant 0 : index
    %c0_101 = arith.constant 0 : index
    %80 = vector.load %arg15[%c2_99, %c0_100, %c0_101] : memref<14x8x128xf32, #tpu.memory_space<vmem>>, vector<10x8x128xf32>
    %81 = vector.shape_cast %80 : vector<10x8x128xf32> to vector<80x128xf32>
    %82 = arith.truncf %81 : vector<80x128xf32> to vector<80x128xbf16>
    %c2_102 = arith.constant 2 : index
    %c0_103 = arith.constant 0 : index
    %c0_104 = arith.constant 0 : index
    %83 = vector.load %arg4[%c2_102, %c0_103, %c0_104] : memref<5x128x256xbf16, #tpu.memory_space<vmem>>, vector<1x128x256xbf16>
    %84 = vector.shape_cast %83 : vector<1x128x256xbf16> to vector<128x256xbf16>
    %cst_105 = arith.constant dense<0.000000e+00> : vector<80x256xf32>
    %85 = tpu.matmul %82, %84, %cst_105 {dimension_numbers = #tpu.dot_dimension_numbers<[1], [0], [0], [1], [0, 0, 1, 1], [], []>} : vector<80x128xbf16>, vector<128x256xbf16>, vector<80x256xf32> -> vector<80x256xf32>
    %86 = vector.shape_cast %85 : vector<80x256xf32> to vector<10x8x256xf32>
    %c0_106 = arith.constant 0 : index
    %c0_107 = arith.constant 0 : index
    %c0_108 = arith.constant 0 : index
    %87 = vector.load %arg16[%c0_106, %c0_107, %c0_108] : memref<10x8x256xf32, #tpu.memory_space<vmem>>, vector<10x8x256xf32>
    %88 = arith.addf %87, %86 : vector<10x8x256xf32>
    %c0_109 = arith.constant 0 : index
    %c0_110 = arith.constant 0 : index
    %c0_111 = arith.constant 0 : index
    %89 = vector.load %arg16[%c0_109, %c0_110, %c0_111] : memref<10x8x256xf32, #tpu.memory_space<vmem>>, vector<10x8x256xf32>
    tpu.vector_store %arg16[%c0_109, %c0_110, %c0_111], %88 {strides = array<i32>} : memref<10x8x256xf32, #tpu.memory_space<vmem>>, vector<10x8x256xf32>,
    %c3_112 = arith.constant 3 : index
    %c0_113 = arith.constant 0 : index
    %c0_114 = arith.constant 0 : index
    %90 = vector.load %arg15[%c3_112, %c0_113, %c0_114] : memref<14x8x128xf32, #tpu.memory_space<vmem>>, vector<10x8x128xf32>
    %91 = vector.shape_cast %90 : vector<10x8x128xf32> to vector<80x128xf32>
    %92 = arith.truncf %91 : vector<80x128xf32> to vector<80x128xbf16>
    %c3_115 = arith.constant 3 : index
    %c0_116 = arith.constant 0 : index
    %c0_117 = arith.constant 0 : index
    %93 = vector.load %arg4[%c3_115, %c0_116, %c0_117] : memref<5x128x256xbf16, #tpu.memory_space<vmem>>, vector<1x128x256xbf16>
    %94 = vector.shape_cast %93 : vector<1x128x256xbf16> to vector<128x256xbf16>
    %cst_118 = arith.constant dense<0.000000e+00> : vector<80x256xf32>
    %95 = tpu.matmul %92, %94, %cst_118 {dimension_numbers = #tpu.dot_dimension_numbers<[1], [0], [0], [1], [0, 0, 1, 1], [], []>} : vector<80x128xbf16>, vector<128x256xbf16>, vector<80x256xf32> -> vector<80x256xf32>
    %96 = vector.shape_cast %95 : vector<80x256xf32> to vector<10x8x256xf32>
    %c0_119 = arith.constant 0 : index
    %c0_120 = arith.constant 0 : index
    %c0_121 = arith.constant 0 : index
    %97 = vector.load %arg16[%c0_119, %c0_120, %c0_121] : memref<10x8x256xf32, #tpu.memory_space<vmem>>, vector<10x8x256xf32>
    %98 = arith.addf %97, %96 : vector<10x8x256xf32>
    %c0_122 = arith.constant 0 : index
    %c0_123 = arith.constant 0 : index
    %c0_124 = arith.constant 0 : index
    %99 = vector.load %arg16[%c0_122, %c0_123, %c0_124] : memref<10x8x256xf32, #tpu.memory_space<vmem>>, vector<10x8x256xf32>
    tpu.vector_store %arg16[%c0_122, %c0_123, %c0_124], %98 {strides = array<i32>} : memref<10x8x256xf32, #tpu.memory_space<vmem>>, vector<10x8x256xf32>,
    %c4_125 = arith.constant 4 : index
    %c0_126 = arith.constant 0 : index
    %c0_127 = arith.constant 0 : index
    %100 = vector.load %arg15[%c4_125, %c0_126, %c0_127] : memref<14x8x128xf32, #tpu.memory_space<vmem>>, vector<10x8x128xf32>
    %101 = vector.shape_cast %100 : vector<10x8x128xf32> to vector<80x128xf32>
    %102 = arith.truncf %101 : vector<80x128xf32> to vector<80x128xbf16>
    %c4_128 = arith.constant 4 : index
    %c0_129 = arith.constant 0 : index
    %c0_130 = arith.constant 0 : index
    %103 = vector.load %arg4[%c4_128, %c0_129, %c0_130] : memref<5x128x256xbf16, #tpu.memory_space<vmem>>, vector<1x128x256xbf16>
    %104 = vector.shape_cast %103 : vector<1x128x256xbf16> to vector<128x256xbf16>
    %cst_131 = arith.constant dense<0.000000e+00> : vector<80x256xf32>
    %105 = tpu.matmul %102, %104, %cst_131 {dimension_numbers = #tpu.dot_dimension_numbers<[1], [0], [0], [1], [0, 0, 1, 1], [], []>} : vector<80x128xbf16>, vector<128x256xbf16>, vector<80x256xf32> -> vector<80x256xf32>
    %106 = vector.shape_cast %105 : vector<80x256xf32> to vector<10x8x256xf32>
    %c0_132 = arith.constant 0 : index
    %c0_133 = arith.constant 0 : index
    %c0_134 = arith.constant 0 : index
    %107 = vector.load %arg16[%c0_132, %c0_133, %c0_134] : memref<10x8x256xf32, #tpu.memory_space<vmem>>, vector<10x8x256xf32>
    %108 = arith.addf %107, %106 : vector<10x8x256xf32>
    %c0_135 = arith.constant 0 : index
    %c0_136 = arith.constant 0 : index
    %c0_137 = arith.constant 0 : index
    %109 = vector.load %arg16[%c0_135, %c0_136, %c0_137] : memref<10x8x256xf32, #tpu.memory_space<vmem>>, vector<10x8x256xf32>
    tpu.vector_store %arg16[%c0_135, %c0_136, %c0_137], %108 {strides = array<i32>} : memref<10x8x256xf32, #tpu.memory_space<vmem>>, vector<10x8x256xf32>,
    %c0_138 = arith.constant 0 : index
    %c0_139 = arith.constant 0 : index
    %c0_140 = arith.constant 0 : index
    %110 = vector.load %arg16[%c0_138, %c0_139, %c0_140] : memref<10x8x256xf32, #tpu.memory_space<vmem>>, vector<10x8x128xf32>
    %c0_141 = arith.constant 0 : index
    %c0_142 = arith.constant 0 : index
    %c128_143 = arith.constant 128 : index
    %111 = vector.load %arg16[%c0_141, %c0_142, %c128_143] : memref<10x8x256xf32, #tpu.memory_space<vmem>>, vector<10x8x128xf32>
    %112 = arith.maximumf %110, %111 : vector<10x8x128xf32>
    %c0_144 = arith.constant 0 : index
    %c0_145 = arith.constant 0 : index
    %c0_146 = arith.constant 0 : index
    %113 = vector.load %arg17[%c0_144, %c0_145, %c0_146] : memref<10x8x128xf32, #tpu.memory_space<vmem>>, vector<10x8x128xf32>
    tpu.vector_store %arg17[%c0_144, %c0_145, %c0_146], %112 {strides = array<i32>} : memref<10x8x128xf32, #tpu.memory_space<vmem>>, vector<10x8x128xf32>,
    %c0_147 = arith.constant 0 : index
    %c0_148 = arith.constant 0 : index
    %c0_149 = arith.constant 0 : index
    %114 = tpu.strided_load %arg17[%c0_147, %c0_148, %c0_149] {strides = array<i32: 2, 1, 1>} : memref<10x8x128xf32, #tpu.memory_space<vmem>>, vector<5x8x128xf32>
    %c1_150 = arith.constant 1 : index
    %c0_151 = arith.constant 0 : index
    %c0_152 = arith.constant 0 : index
    %115 = tpu.strided_load %arg17[%c1_150, %c0_151, %c0_152] {strides = array<i32: 2, 1, 1>} : memref<10x8x128xf32, #tpu.memory_space<vmem>>, vector<5x8x128xf32>
    %116 = arith.maximumf %114, %115 : vector<5x8x128xf32>
    %c0_153 = arith.constant 0 : index
    %c0_154 = arith.constant 0 : index
    %117 = vector.load %arg5[%c0_153, %c0_154] : memref<1x128xf32, #tpu.memory_space<vmem>>, vector<1x128xf32>
    %118 = vector.shape_cast %117 : vector<1x128xf32> to vector<1x1x128xf32>
    %119 = vector.broadcast %118 : vector<1x1x128xf32> to vector<5x8x128xf32>
    %120 = arith.addf %116, %119 : vector<5x8x128xf32>
    %cst_155 = arith.constant 0.000000e+00 : f32
    %121 = vector.broadcast %cst_155 : f32 to vector<5x8x128xf32>
    %122 = arith.maximumf %120, %121 : vector<5x8x128xf32>
    %c0_156 = arith.constant 0 : index
    %c0_157 = arith.constant 0 : index
    %c0_158 = arith.constant 0 : index
    %123 = vector.load %arg18[%c0_156, %c0_157, %c0_158] : memref<5x8x128xf32, #tpu.memory_space<vmem>>, vector<5x8x128xf32>
    tpu.vector_store %arg18[%c0_156, %c0_157, %c0_158], %122 {strides = array<i32>} : memref<5x8x128xf32, #tpu.memory_space<vmem>>, vector<5x8x128xf32>,
    %c0_159 = arith.constant 0 : index
    %c0_160 = arith.constant 0 : index
    %c0_161 = arith.constant 0 : index
    %124 = vector.load %arg18[%c0_159, %c0_160, %c0_161] : memref<5x8x128xf32, #tpu.memory_space<vmem>>, vector<1x8x128xf32>
    %125 = vector.shape_cast %124 : vector<1x8x128xf32> to vector<8x128xf32>
    %126 = arith.truncf %125 : vector<8x128xf32> to vector<8x128xbf16>
    %c0_162 = arith.constant 0 : index
    %c0_163 = arith.constant 0 : index
    %c0_164 = arith.constant 0 : index
    %127 = vector.load %arg6[%c0_162, %c0_163, %c0_164] : memref<5x128x128xbf16, #tpu.memory_space<vmem>>, vector<1x128x128xbf16>
    %128 = vector.shape_cast %127 : vector<1x128x128xbf16> to vector<128x128xbf16>
    %cst_165 = arith.constant dense<0.000000e+00> : vector<8x128xf32>
    %129 = tpu.matmul %126, %128, %cst_165 {dimension_numbers = #tpu.dot_dimension_numbers<[1], [0], [0], [1], [0, 0, 1, 1], [], []>} : vector<8x128xbf16>, vector<128x128xbf16>, vector<8x128xf32> -> vector<8x128xf32>
    %c1_166 = arith.constant 1 : index
    %c0_167 = arith.constant 0 : index
    %c0_168 = arith.constant 0 : index
    %130 = vector.load %arg18[%c1_166, %c0_167, %c0_168] : memref<5x8x128xf32, #tpu.memory_space<vmem>>, vector<1x8x128xf32>
    %131 = vector.shape_cast %130 : vector<1x8x128xf32> to vector<8x128xf32>
    %132 = arith.truncf %131 : vector<8x128xf32> to vector<8x128xbf16>
    %c1_169 = arith.constant 1 : index
    %c0_170 = arith.constant 0 : index
    %c0_171 = arith.constant 0 : index
    %133 = vector.load %arg6[%c1_169, %c0_170, %c0_171] : memref<5x128x128xbf16, #tpu.memory_space<vmem>>, vector<1x128x128xbf16>
    %134 = vector.shape_cast %133 : vector<1x128x128xbf16> to vector<128x128xbf16>
    %cst_172 = arith.constant dense<0.000000e+00> : vector<8x128xf32>
    %135 = tpu.matmul %132, %134, %cst_172 {dimension_numbers = #tpu.dot_dimension_numbers<[1], [0], [0], [1], [0, 0, 1, 1], [], []>} : vector<8x128xbf16>, vector<128x128xbf16>, vector<8x128xf32> -> vector<8x128xf32>
    %136 = arith.addf %129, %135 : vector<8x128xf32>
    %c2_173 = arith.constant 2 : index
    %c0_174 = arith.constant 0 : index
    %c0_175 = arith.constant 0 : index
    %137 = vector.load %arg18[%c2_173, %c0_174, %c0_175] : memref<5x8x128xf32, #tpu.memory_space<vmem>>, vector<1x8x128xf32>
    %138 = vector.shape_cast %137 : vector<1x8x128xf32> to vector<8x128xf32>
    %139 = arith.truncf %138 : vector<8x128xf32> to vector<8x128xbf16>
    %c2_176 = arith.constant 2 : index
    %c0_177 = arith.constant 0 : index
    %c0_178 = arith.constant 0 : index
    %140 = vector.load %arg6[%c2_176, %c0_177, %c0_178] : memref<5x128x128xbf16, #tpu.memory_space<vmem>>, vector<1x128x128xbf16>
    %141 = vector.shape_cast %140 : vector<1x128x128xbf16> to vector<128x128xbf16>
    %cst_179 = arith.constant dense<0.000000e+00> : vector<8x128xf32>
    %142 = tpu.matmul %139, %141, %cst_179 {dimension_numbers = #tpu.dot_dimension_numbers<[1], [0], [0], [1], [0, 0, 1, 1], [], []>} : vector<8x128xbf16>, vector<128x128xbf16>, vector<8x128xf32> -> vector<8x128xf32>
    %143 = arith.addf %136, %142 : vector<8x128xf32>
    %c3_180 = arith.constant 3 : index
    %c0_181 = arith.constant 0 : index
    %c0_182 = arith.constant 0 : index
    %144 = vector.load %arg18[%c3_180, %c0_181, %c0_182] : memref<5x8x128xf32, #tpu.memory_space<vmem>>, vector<1x8x128xf32>
    %145 = vector.shape_cast %144 : vector<1x8x128xf32> to vector<8x128xf32>
    %146 = arith.truncf %145 : vector<8x128xf32> to vector<8x128xbf16>
    %c3_183 = arith.constant 3 : index
    %c0_184 = arith.constant 0 : index
    %c0_185 = arith.constant 0 : index
    %147 = vector.load %arg6[%c3_183, %c0_184, %c0_185] : memref<5x128x128xbf16, #tpu.memory_space<vmem>>, vector<1x128x128xbf16>
    %148 = vector.shape_cast %147 : vector<1x128x128xbf16> to vector<128x128xbf16>
    %cst_186 = arith.constant dense<0.000000e+00> : vector<8x128xf32>
    %149 = tpu.matmul %146, %148, %cst_186 {dimension_numbers = #tpu.dot_dimension_numbers<[1], [0], [0], [1], [0, 0, 1, 1], [], []>} : vector<8x128xbf16>, vector<128x128xbf16>, vector<8x128xf32> -> vector<8x128xf32>
    %150 = arith.addf %143, %149 : vector<8x128xf32>
    %c4_187 = arith.constant 4 : index
    %c0_188 = arith.constant 0 : index
    %c0_189 = arith.constant 0 : index
    %151 = vector.load %arg18[%c4_187, %c0_188, %c0_189] : memref<5x8x128xf32, #tpu.memory_space<vmem>>, vector<1x8x128xf32>
    %152 = vector.shape_cast %151 : vector<1x8x128xf32> to vector<8x128xf32>
    %153 = arith.truncf %152 : vector<8x128xf32> to vector<8x128xbf16>
    %c4_190 = arith.constant 4 : index
    %c0_191 = arith.constant 0 : index
    %c0_192 = arith.constant 0 : index
    %154 = vector.load %arg6[%c4_190, %c0_191, %c0_192] : memref<5x128x128xbf16, #tpu.memory_space<vmem>>, vector<1x128x128xbf16>
    %155 = vector.shape_cast %154 : vector<1x128x128xbf16> to vector<128x128xbf16>
    %cst_193 = arith.constant dense<0.000000e+00> : vector<8x128xf32>
    %156 = tpu.matmul %153, %155, %cst_193 {dimension_numbers = #tpu.dot_dimension_numbers<[1], [0], [0], [1], [0, 0, 1, 1], [], []>} : vector<8x128xbf16>, vector<128x128xbf16>, vector<8x128xf32> -> vector<8x128xf32>
    %157 = arith.addf %150, %156 : vector<8x128xf32>
    %c0_194 = arith.constant 0 : index
    %c0_195 = arith.constant 0 : index
    %158 = vector.load %arg7[%c0_194, %c0_195] : memref<1x128xf32, #tpu.memory_space<vmem>>, vector<1x128xf32>
    %159 = vector.broadcast %158 : vector<1x128xf32> to vector<8x128xf32>
    %160 = arith.addf %157, %159 : vector<8x128xf32>
    %161 = arith.truncf %160 : vector<8x128xf32> to vector<8x128xbf16>
    %c0_196 = arith.constant 0 : index
    %c0_197 = arith.constant 0 : index
    %162 = vector.load %arg8[%c0_196, %c0_197] : memref<128x128xbf16, #tpu.memory_space<vmem>>, vector<128x128xbf16>
    %cst_198 = arith.constant dense<0.000000e+00> : vector<8x128xf32>
    %163 = tpu.matmul %161, %162, %cst_198 {dimension_numbers = #tpu.dot_dimension_numbers<[1], [0], [0], [1], [0, 0, 1, 1], [], []>} : vector<8x128xbf16>, vector<128x128xbf16>, vector<8x128xf32> -> vector<8x128xf32>
    %c0_199 = arith.constant 0 : index
    %c0_200 = arith.constant 0 : index
    %164 = vector.load %arg9[%c0_199, %c0_200] : memref<1x128xf32, #tpu.memory_space<vmem>>, vector<1x128xf32>
    %165 = vector.broadcast %164 : vector<1x128xf32> to vector<8x128xf32>
    %166 = arith.addf %163, %165 : vector<8x128xf32>
    %167 = arith.truncf %166 : vector<8x128xf32> to vector<8x128xbf16>
    %c0_201 = arith.constant 0 : index
    %c0_202 = arith.constant 0 : index
    %168 = vector.load %arg10[%c0_201, %c0_202] : memref<128x128xbf16, #tpu.memory_space<vmem>>, vector<128x128xbf16>
    %cst_203 = arith.constant dense<0.000000e+00> : vector<8x128xf32>
    %169 = tpu.matmul %167, %168, %cst_203 {dimension_numbers = #tpu.dot_dimension_numbers<[1], [0], [0], [1], [0, 0, 1, 1], [], []>} : vector<8x128xbf16>, vector<128x128xbf16>, vector<8x128xf32> -> vector<8x128xf32>
    %c0_204 = arith.constant 0 : index
    %c0_205 = arith.constant 0 : index
    %170 = vector.load %arg11[%c0_204, %c0_205] : memref<1x128xf32, #tpu.memory_space<vmem>>, vector<1x128xf32>
    %171 = vector.broadcast %170 : vector<1x128xf32> to vector<8x128xf32>
    %172 = arith.addf %169, %171 : vector<8x128xf32>
    %c0_206 = arith.constant 0 : index
    %c0_207 = arith.constant 0 : index
    %173 = vector.load %arg12[%c0_206, %c0_207] : memref<8x128xf32, #tpu.memory_space<vmem>>, vector<8x128xf32>
    tpu.vector_store %arg12[%c0_206, %c0_207], %172 {strides = array<i32>} : memref<8x128xf32, #tpu.memory_space<vmem>>, vector<8x128xf32>,
    return
  }
  func.func @transform_0(%arg0: i32) -> (i32, i32, i32) {
    %c0_i32 = arith.constant 0 : i32
    %c0_i32_0 = arith.constant 0 : i32
    %c0_i32_1 = arith.constant 0 : i32
    return %c0_i32, %arg0, %c0_i32_0 : i32, i32, i32
  }
  func.func @transform_1(%arg0: i32) -> (i32, i32, i32) {
    %c0_i32 = arith.constant 0 : i32
    %c0_i32_0 = arith.constant 0 : i32
    %c0_i32_1 = arith.constant 0 : i32
    %c0_i32_2 = arith.constant 0 : i32
    return %c0_i32, %c0_i32_0, %c0_i32_1 : i32, i32, i32
  }
  func.func @transform_2(%arg0: i32) -> (i32, i32) {
    %c0_i32 = arith.constant 0 : i32
    %c0_i32_0 = arith.constant 0 : i32
    %c0_i32_1 = arith.constant 0 : i32
    return %c0_i32, %c0_i32_0 : i32, i32
  }
  func.func @transform_3(%arg0: i32) -> (i32, i32, i32) {
    %c0_i32 = arith.constant 0 : i32
    %c0_i32_0 = arith.constant 0 : i32
    %c0_i32_1 = arith.constant 0 : i32
    %c0_i32_2 = arith.constant 0 : i32
    return %c0_i32, %c0_i32_0, %c0_i32_1 : i32, i32, i32
  }
  func.func @transform_4(%arg0: i32) -> (i32, i32) {
    %c0_i32 = arith.constant 0 : i32
    %c0_i32_0 = arith.constant 0 : i32
    %c0_i32_1 = arith.constant 0 : i32
    return %c0_i32, %c0_i32_0 : i32, i32
  }
  func.func @transform_5(%arg0: i32) -> (i32, i32, i32) {
    %c0_i32 = arith.constant 0 : i32
    %c0_i32_0 = arith.constant 0 : i32
    %c0_i32_1 = arith.constant 0 : i32
    %c0_i32_2 = arith.constant 0 : i32
    return %c0_i32, %c0_i32_0, %c0_i32_1 : i32, i32, i32
  }
  func.func @transform_6(%arg0: i32) -> (i32, i32) {
    %c0_i32 = arith.constant 0 : i32
    %c0_i32_0 = arith.constant 0 : i32
    %c0_i32_1 = arith.constant 0 : i32
    return %c0_i32, %c0_i32_0 : i32, i32
  }
  func.func @transform_7(%arg0: i32) -> (i32, i32) {
    %c0_i32 = arith.constant 0 : i32
    %c0_i32_0 = arith.constant 0 : i32
    %c0_i32_1 = arith.constant 0 : i32
    return %c0_i32, %c0_i32_0 : i32, i32
  }
  func.func @transform_8(%arg0: i32) -> (i32, i32) {
    %c0_i32 = arith.constant 0 : i32
    %c0_i32_0 = arith.constant 0 : i32
    %c0_i32_1 = arith.constant 0 : i32
    return %c0_i32, %c0_i32_0 : i32, i32
  }
  func.func @transform_9(%arg0: i32) -> (i32, i32) {
    %c0_i32 = arith.constant 0 : i32
    %c0_i32_0 = arith.constant 0 : i32
    %c0_i32_1 = arith.constant 0 : i32
    return %c0_i32, %c0_i32_0 : i32, i32
  }
  func.func @transform_10(%arg0: i32) -> (i32, i32) {
    %c0_i32 = arith.constant 0 : i32
    %c0_i32_0 = arith.constant 0 : i32
    %c0_i32_1 = arith.constant 0 : i32
    return %c0_i32, %c0_i32_0 : i32, i32
  }
  func.func @transform_11(%arg0: i32) -> (i32, i32) {
    %c0_i32 = arith.constant 0 : i32
    %c0_i32_0 = arith.constant 0 : i32
    return %arg0, %c0_i32 : i32, i32
  }
}

</mosaic_0001>

<bundles_post_ra>
// kernel: super_simple_net.1
= control target key start
LH: loop header
LB: loop body
LE: loop exit
PB: predicated region body
PF: predicated region fallthrough
CT: control target
= control target key end

     0   :  { %16 = vsyncpa [#allocation10], 0  ;;  %s8103_s0 = inlined_call_operand.vmem [shape: f32[32,16,128], index: 0, kind: input, shape index: {}]   ;;  %s8104_s1 = inlined_call_operand.vmem [shape: bf16[5,128,256], index: 1, kind: input, shape index: {}]   ;;  %s8105_s2 = inlined_call_operand.vmem [shape: f32[1,128], index: 2, kind: input, shape index: {}]   ;;  %s8106_s3 = inlined_call_operand.vmem [shape: bf16[5,128,256], index: 3, kind: input, shape index: {}]   ;;  %s8107_s4 = inlined_call_operand.vmem [shape: f32[1,128], index: 4, kind: input, shape index: {}]   ;;  %s8108_s5 = inlined_call_operand.vmem [shape: bf16[5,128,128], index: 5, kind: input, shape index: {}]   ;;  %s8109_s6 = inlined_call_operand.vmem [shape: f32[1,128], index: 6, kind: input, shape index: {}]   ;;  %s8110_s7 = inlined_call_operand.vmem [shape: bf16[128,128], index: 7, kind: input, shape index: {}]   ;;  %s8111_s8 = inlined_call_operand.vmem [shape: f32[1,128], index: 8, kind: input, shape index: {}]   ;;  %s8112_s9 = inlined_call_operand.vmem [shape: bf16[128,128], index: 9, kind: input, shape index: {}]   ;;  %s8113_s10 = inlined_call_operand.vmem [shape: f32[1,128], index: 10, kind: input, shape index: {}]   ;;  %s8114_s11 = inlined_call_operand.hbm [shape: f32[16,128], index: 11, kind: output, shape index: {}]  }
   0x1   :  { %18 = vsyncpa [#allocation10 + $0x1], 0  ;;  %s6734_s17 = smov 0   ;;  %s6736_s18 = smov 0  }
   0x2   :  { %s6738_s19 = smov 0   ;;  %s6740_s20 = smov 0  }
   0x3 LB: > { %s8115_s21 = sadd.s32 4294967295, %s6668_s20   ;;  %s5208_s22 = sadd.s32 4294967294, %s6668_s20   ;;  %s6668_s20 = sphi %s6740_s20, %s8122_s20   ;;  %s6664_s19 = sphi %s6738_s19, %s8121_s19   ;;  %s6660_s18 = sphi %s6736_s18, %s8120_s18   ;;  %s6656_s17 = sphi %s6734_s17, %s8119_s17  }
   0x4   : > { %s6757_s23 = sadd.s32 1, %s6668_s20   ;;  %s31_s24 = sadd.s32 1, %s6664_s19 }
   0x5   : > { %s28_s25 = ssub.s32 %s6668_s20, %s6757_s23  ;;  %p38_p0 = scmp.ne.s32.totalorder %s6664_s19, %s6660_s18 }
   0x6   : > { %p29_p1 = scmp.eq.s32.totalorder %s28_s25, 0  ;;  %p39_p2 = scmp.eq.s32.totalorder %s6668_s20, 0 }
   0x7   : > { %p278_p3 = scmp.eq.s32.totalorder %s8115_s21, 1  ;;  %p283_p4 = scmp.ne.s32.totalorder %s6660_s18, %s6656_s17 }
   0x8   : > { %s6770_s26 = scalar_select %p29_p1, %s6664_s19, %s31_s24  }
   0x9   : > { %p40_p5 = por %p39_p2, %p38_p0  ;;  %p6772_p6 = por %p278_p3, %p38_p0 }
   0xa   : > { %p284_p7 = scmp.eq.s32.totalorder %s5208_s22, 1  ;;  %p5210_p9 = scmp.ge.s32.totalorder %s6668_s20, 2 }
   0xc   : > { %p6776_p8 = por %p284_p7, %p283_p4  ;;  %330 = sbr.rel (%p5210_p9) target bundleno = 39 (0x27), region = 56 }
  0x13   : > { %333 = sbr.rel (!%p40_p5) target bundleno = 39 (0x27), region = 60  ;;  %s335_s29 = sand.u32 (%p40_p5), 1, %s6664_s19  }
  0x14   : > { %s5212_s30 = sshll.u32 (%p40_p5), %s6668_s20, 3  ;;  %s5211_s12 = sshll.u32 (%p40_p5), %s335_s29, 8 }
  0x15   : > { %s6788_s15 = scalar_lea.vmem (%p40_p5), %s8103_s0, %s5212_s30  ;;  %s6793_s16 = scalar_lea.vmem (%p40_p5), [#allocation8], %s5211_s12 }
  0x16   : > { %v429_v0 = vld [vmem:[%s6788_s15] sm:$0xff] (%p40_p5)  ;;  %v431_v1 = vld [vmem:[%s6788_s15 + $0x10] sm:$0xff] (%p40_p5) }
  0x17   : > { %v433_v2 = vld [vmem:[%s6788_s15 + $0x20] sm:$0xff] (%p40_p5)  ;;  %430 = vst [vmem:[%s6793_s16] sm:$0xff] (%p40_p5), %v429_v0  ;;  %432 = vst [vmem:[%s6793_s16 + $0x8] sm:$0xff] (%p40_p5), %v431_v1  ;;  %v435_v3 = vld [vmem:[%s6788_s15 + $0x30] sm:$0xff] (%p40_p5) }
  0x18   : > { %434 = vst [vmem:[%s6793_s16 + $0x10] sm:$0xff] (%p40_p5), %v433_v2  ;;  %v437_v4 = vld [vmem:[%s6788_s15 + $0x40] sm:$0xff] (%p40_p5)  ;;  %v439_v5 = vld [vmem:[%s6788_s15 + $0x50] sm:$0xff] (%p40_p5)  ;;  %436 = vst [vmem:[%s6793_s16 + $0x18] sm:$0xff] (%p40_p5), %v435_v3 }
  0x19   : > { %438 = vst [vmem:[%s6793_s16 + $0x20] sm:$0xff] (%p40_p5), %v437_v4  ;;  %440 = vst [vmem:[%s6793_s16 + $0x28] sm:$0xff] (%p40_p5), %v439_v5  ;;  %v441_v6 = vld [vmem:[%s6788_s15 + $0x60] sm:$0xff] (%p40_p5)  ;;  %v443_v7 = vld [vmem:[%s6788_s15 + $0x70] sm:$0xff] (%p40_p5) }
  0x1a   : > { %v445_v8 = vld [vmem:[%s6788_s15 + $0x80] sm:$0xff]  ;;  %442 = vst [vmem:[%s6793_s16 + $0x30] sm:$0xff] %v441_v6  ;;  %444 = vst [vmem:[%s6793_s16 + $0x38] sm:$0xff] %v443_v7  ;;  %v447_v9 = vld [vmem:[%s6788_s15 + $0x90] sm:$0xff] }
  0x1b   : > { %446 = vst [vmem:[%s6793_s16 + $0x40] sm:$0xff] %v445_v8  ;;  %v449_v10 = vld [vmem:[%s6788_s15 + $0xa0] sm:$0xff]  ;;  %v451_v11 = vld [vmem:[%s6788_s15 + $0xb0] sm:$0xff]  ;;  %448 = vst [vmem:[%s6793_s16 + $0x48] sm:$0xff] %v447_v9 }
  0x1c   : > { %450 = vst [vmem:[%s6793_s16 + $0x50] sm:$0xff] %v449_v10  ;;  %452 = vst [vmem:[%s6793_s16 + $0x58] sm:$0xff] %v451_v11  ;;  %v453_v12 = vld [vmem:[%s6788_s15 + $0xc0] sm:$0xff]  ;;  %v455_v13 = vld [vmem:[%s6788_s15 + $0xd0] sm:$0xff] }
  0x1d   : > { %v457_v14 = vld [vmem:[%s6788_s15 + $0xe0] sm:$0xff]  ;;  %454 = vst [vmem:[%s6793_s16 + $0x60] sm:$0xff] %v453_v12  ;;  %456 = vst [vmem:[%s6793_s16 + $0x68] sm:$0xff] %v455_v13  ;;  %v459_v15 = vld [vmem:[%s6788_s15 + $0xf0] sm:$0xff] }
  0x1e   : > { %458 = vst [vmem:[%s6793_s16 + $0x70] sm:$0xff] %v457_v14  ;;  %v461_v16 = vld [vmem:[%s6788_s15 + $0x100] sm:$0xff]  ;;  %v463_v17 = vld [vmem:[%s6788_s15 + $0x110] sm:$0xff]  ;;  %460 = vst [vmem:[%s6793_s16 + $0x78] sm:$0xff] %v459_v15 }
  0x1f   : > { %462 = vst [vmem:[%s6793_s16 + $0x80] sm:$0xff] %v461_v16  ;;  %464 = vst [vmem:[%s6793_s16 + $0x88] sm:$0xff] %v463_v17  ;;  %v465_v18 = vld [vmem:[%s6788_s15 + $0x120] sm:$0xff]  ;;  %v467_v19 = vld [vmem:[%s6788_s15 + $0x130] sm:$0xff] }
  0x20   : > { %v469_v20 = vld [vmem:[%s6788_s15 + $0x140] sm:$0xff]  ;;  %466 = vst [vmem:[%s6793_s16 + $0x90] sm:$0xff] %v465_v18  ;;  %468 = vst [vmem:[%s6793_s16 + $0x98] sm:$0xff] %v467_v19  ;;  %v471_v21 = vld [vmem:[%s6788_s15 + $0x150] sm:$0xff] }
  0x21   : > { %470 = vst [vmem:[%s6793_s16 + $0xa0] sm:$0xff] %v469_v20  ;;  %v473_v22 = vld [vmem:[%s6788_s15 + $0x160] sm:$0xff]  ;;  %v475_v23 = vld [vmem:[%s6788_s15 + $0x170] sm:$0xff]  ;;  %472 = vst [vmem:[%s6793_s16 + $0xa8] sm:$0xff] %v471_v21 }
  0x22   : > { %474 = vst [vmem:[%s6793_s16 + $0xb0] sm:$0xff] %v473_v22  ;;  %476 = vst [vmem:[%s6793_s16 + $0xb8] sm:$0xff] %v475_v23  ;;  %v477_v24 = vld [vmem:[%s6788_s15 + $0x180] sm:$0xff]  ;;  %v479_v25 = vld [vmem:[%s6788_s15 + $0x190] sm:$0xff] }
  0x23   : > { %v481_v26 = vld [vmem:[%s6788_s15 + $0x1a0] sm:$0xff]  ;;  %478 = vst [vmem:[%s6793_s16 + $0xc0] sm:$0xff] %v477_v24  ;;  %480 = vst [vmem:[%s6793_s16 + $0xc8] sm:$0xff] %v479_v25  ;;  %v483_v27 = vld [vmem:[%s6788_s15 + $0x1b0] sm:$0xff] }
  0x24   : > { %482 = vst [vmem:[%s6793_s16 + $0xd0] sm:$0xff] %v481_v26  ;;  %v485_v28 = vld [vmem:[%s6788_s15 + $0x1c0] sm:$0xff]  ;;  %v487_v29 = vld [vmem:[%s6788_s15 + $0x1d0] sm:$0xff]  ;;  %484 = vst [vmem:[%s6793_s16 + $0xd8] sm:$0xff] %v483_v27 }
  0x25   : > { %486 = vst [vmem:[%s6793_s16 + $0xe0] sm:$0xff] %v485_v28  ;;  %488 = vst [vmem:[%s6793_s16 + $0xe8] sm:$0xff] %v487_v29  ;;  %v489_v30 = vld [vmem:[%s6788_s15 + $0x1e0] sm:$0xff]  ;;  %v491_v31 = vld [vmem:[%s6788_s15 + $0x1f0] sm:$0xff] }
  0x26   : > { %490 = vst [vmem:[%s6793_s16 + $0xf0] sm:$0xff] %v489_v30  ;;  %492 = vst [vmem:[%s6793_s16 + $0xf8] sm:$0xff] %v491_v31 }
  0x27 PF: > { %p5213_p10 = scmp.ge.s32.totalorder %s6668_s20, 1  ;;  %p497_p11 = scmp.lt.s32.totalorder %s6668_s20, 3 }
  0x29   : > { %p498_p12 = pnand %p5213_p10, %p497_p11 }
  0x2a   : > { %v6310_v32 = vld [vmem:[%s8104_s1 + $0x4] ss:$8 sps:$4 sm:$0xff] (!%p498_p12)   ;;  %v6312_v33 = vld [vmem:[%s8104_s1] ss:$8 sps:$4 sm:$0xff] (!%p498_p12)   ;;  %v6670_v34 = vmov (!%p498_p12), 0   ;;  %s6894_s25 = sand.u32 (!%p498_p12), 1, %s6660_s18  }
  0x2b   : > { %501 = sbr.rel (%p498_p12) target bundleno = 1894 (0x766), region = 98  ;;  %714 = vmatprep.mubr.bf16.mxu0 (!%p498_p12), %v6670_v34  ;;  %754 = vmatprep.mubr.bf16.mxu1 (!%p498_p12), %v6670_v34  ;;  %v6313_v35 = vld [vmem:[%s8104_s1 + $0x14] ss:$8 sps:$4 sm:$0xff] (!%p498_p12)   ;;  %v6315_v36 = vld [vmem:[%s8104_s1 + $0x10] ss:$8 sps:$4 sm:$0xff] (!%p498_p12)   ;;  %s5214_s14 = sshll.u32 (!%p498_p12), %s6894_s25, 8 }
  0x2c   : > { %682 = vmatprep.subr.bf16.mxu0 (!%p498_p12), %v6310_v32  ;;  %5948 = vmatprep.subr.bf16.mxu1 (!%p498_p12), %v6310_v32  ;;  %v6316_v37 = vld [vmem:[%s8104_s1 + $0x24] ss:$8 sps:$4 sm:$0xff] (!%p498_p12)   ;;  %v6318_v38 = vld [vmem:[%s8104_s1 + $0x20] ss:$8 sps:$4 sm:$0xff] (!%p498_p12)   ;;  %v6319_v39 = vld [vmem:[%s8104_s1 + $0x34] ss:$8 sps:$4 sm:$0xff] (!%p498_p12)  }
  0x2d   : > { %683 = vmatpush1.bf16.msra.mxu0 (!%p498_p12), %v6312_v33  ;;  %5956 = vmatpush1.bf16.msra.mxu1 (!%p498_p12), %v6312_v33  ;;  %v6321_v40 = vld [vmem:[%s8104_s1 + $0x30] ss:$8 sps:$4 sm:$0xff] (!%p498_p12)   ;;  %v6322_v41 = vld [vmem:[%s8104_s1 + $0x44] ss:$8 sps:$4 sm:$0xff] (!%p498_p12)   ;;  %v6324_v42 = vld [vmem:[%s8104_s1 + $0x40] ss:$8 sps:$4 sm:$0xff] (!%p498_p12)  }
  0x2e   : > { %684 = vmatprep.subr.bf16.mxu0 (!%p498_p12), %v6313_v35  ;;  %5949 = vmatprep.subr.bf16.mxu1 (!%p498_p12), %v6313_v35  ;;  %v6325_v43 = vld [vmem:[%s8104_s1 + $0x54] ss:$8 sps:$4 sm:$0xff] (!%p498_p12)   ;;  %v6327_v44 = vld [vmem:[%s8104_s1 + $0x50] ss:$8 sps:$4 sm:$0xff] (!%p498_p12)   ;;  %v6328_v45 = vld [vmem:[%s8104_s1 + $0x64] ss:$8 sps:$4 sm:$0xff] (!%p498_p12)  }
  0x2f   : > { %v6330_v46 = vld [vmem:[%s8104_s1 + $0x60] ss:$8 sps:$4 sm:$0xff] (!%p498_p12)   ;;  %v6331_v47 = vld [vmem:[%s8104_s1 + $0x74] ss:$8 sps:$4 sm:$0xff] (!%p498_p12)   ;;  %v6333_v48 = vld [vmem:[%s8104_s1 + $0x70] ss:$8 sps:$4 sm:$0xff] (!%p498_p12)  }
  0x30   : > { %s6912_s12 = scalar_lea.vmem (!%p498_p12), [#allocation8], %s5214_s14  ;;  %v6336_v51 = vld [vmem:[%s8104_s1 + $0x84] ss:$8 sps:$4 sm:$0xff] (!%p498_p12)   ;;  %v6334_v53 = vld [vmem:[%s8104_s1 + $0x80] ss:$8 sps:$4 sm:$0xff] (!%p498_p12)   ;;  %vm6672_vm0 = vmmov (!%p498_p12), 0  }
  0x31   : > { %685 = vmatpush1.bf16.msra.mxu0 (!%p498_p12), %v6315_v36  ;;  %5957 = vmatpush1.bf16.msra.mxu1 (!%p498_p12), %v6315_v36  ;;  %v544_v49 = vld [vmem:[%s6912_s12] sm:$0xff] (!%p498_p12)  ;;  %v6916_v50 = vld [vmem:[%s6912_s12 + $0x8] sm:$0xff] (!%p498_p12)  ;;  %v6339_v54 = vld [vmem:[%s8104_s1 + $0x94] ss:$8 sps:$4 sm:$0xff] (!%p498_p12)   ;;  %s5215_s21 = sshll.u32 (!%p498_p12), %s6894_s25, 3  ;;  %s8118_s22 = sadd.s32 (!%p498_p12), 4294967295, %s6668_s20  }
  0x32   : > { %686 = vmatprep.subr.bf16.mxu0 %v6316_v37  ;;  %5950 = vmatprep.subr.bf16.mxu1 %v6316_v37  ;;  %v572_v52 = vpack.c.bf16 %v6916_v50, %v544_v49  ;;  %v6337_v55 = vld [vmem:[%s8104_s1 + $0x90] ss:$8 sps:$4 sm:$0xff]   ;;  %v6342_v58 = vld [vmem:[%s8104_s1 + $0xa4] ss:$8 sps:$4 sm:$0xff]   ;;  %v6340_v60 = vld [vmem:[%s8104_s1 + $0xa0] ss:$8 sps:$4 sm:$0xff]  }
  0x33   : > { %v546_v56 = vld [vmem:[%s6912_s12 + $0x10] sm:$0xff]  ;;  %v547_v57 = vld [vmem:[%s6912_s12 + $0x18] sm:$0xff]  ;;  %v548_v63 = vld [vmem:[%s6912_s12 + $0x20] sm:$0xff]  ;;  %s5742_s24 = sshll.u32 %s8118_s22, 7  ;;  %s542_s29 = scalar_lea.vmem [#allocation9], %s5215_s21 }
  0x34   : > { %v6937_v59 = vpack.c.bf16 %v547_v57, %v546_v56  ;;  %v6345_v61 = vld [vmem:[%s8104_s1 + $0xb4] ss:$8 sps:$4 sm:$0xff]   ;;  %v6343_v62 = vld [vmem:[%s8104_s1 + $0xb0] ss:$8 sps:$4 sm:$0xff]   ;;  %v549_v0 = vld [vmem:[%s6912_s12 + $0x28] sm:$0xff]  ;;  %v940_v15 = vpack.c.bf16 %v546_v56, %v6916_v50  ;;  %v7014_v23 = vpack.c.bf16 %v548_v63, %v547_v57  ;;  %s5143_s30 = sshll.u32 %s542_s29, 4  ;;  %s8059_s14 = scalar_lea.hbm %s8114_s11, %s5742_s24  ;;  %s8061_s30 = int_to_ptr.vmem [resolvable:$true] %s5143_s30 }
  0x35   : > { %687 = vmatpush1.bf16.msra.mxu0 %v6318_v38  ;;  %5958 = vmatpush1.bf16.msra.mxu1 %v6318_v38  ;;  %v6348_v1 = vld [vmem:[%s8104_s1 + $0xc4] ss:$8 sps:$4 sm:$0xff]   ;;  %v6346_v2 = vld [vmem:[%s8104_s1 + $0xc0] ss:$8 sps:$4 sm:$0xff]   ;;  %v6958_v3 = vpack.c.bf16 %v549_v0, %v548_v63  ;;  %v6351_v4 = vld [vmem:[%s8104_s1 + $0xd4] ss:$8 sps:$4 sm:$0xff]  }
  0x36   : > { %688 = vmatprep.subr.bf16.mxu0 %v6319_v39  ;;  %5951 = vmatprep.subr.bf16.mxu1 %v6319_v39  ;;  %v6349_v5 = vld [vmem:[%s8104_s1 + $0xd0] ss:$8 sps:$4 sm:$0xff]   ;;  %v6354_v8 = vld [vmem:[%s8104_s1 + $0xe4] ss:$8 sps:$4 sm:$0xff]   ;;  %v6352_v9 = vld [vmem:[%s8104_s1 + $0xe0] ss:$8 sps:$4 sm:$0xff]  }
  0x37   : > { %v550_v6 = vld [vmem:[%s6912_s12 + $0x30] sm:$0xff]  ;;  %v6969_v7 = vld [vmem:[%s6912_s12 + $0x38] sm:$0xff]  ;;  %v6360_v13 = vld [vmem:[%s8104_s1 + $0x104] ss:$8 sps:$4 sm:$0xff]   ;;  %s5130_s16 = scalar_lea.sflag [#allocation10], %s6894_s25  ;;  %s6673_s21 = smov [#allocation9]  }
  0x38   : > { %v6979_v10 = vpack.c.bf16 %v6969_v7, %v550_v6  ;;  %v6357_v11 = vld [vmem:[%s8104_s1 + $0xf4] ss:$8 sps:$4 sm:$0xff]   ;;  %v6355_v12 = vld [vmem:[%s8104_s1 + $0xf0] ss:$8 sps:$4 sm:$0xff]   ;;  %v6358_v14 = vld [vmem:[%s8104_s1 + $0x100] ss:$8 sps:$4 sm:$0xff]   ;;  %v7036_v31 = vpack.c.bf16 %v550_v6, %v549_v0 }
  0x39   : > { %689 = vmatpush1.bf16.msra.mxu0 %v6321_v40  ;;  %5959 = vmatpush1.bf16.msra.mxu1 %v6321_v40  ;;  %v6363_v16 = vld [vmem:[%s8104_s1 + $0x114] ss:$8 sps:$4 sm:$0xff]   ;;  %v5239_v17 = vld [vmem:[%s6912_s12 + $0x40] sm:$0xff]  ;;  %v5240_v18 = vld [vmem:[%s6912_s12 + $0x48] sm:$0xff]  ;;  %s6610_s22 = sshll.u32 %s6673_s21, 4  ;;  %s6611_s22 = int_to_ptr.vmem [resolvable:$false] %s6610_s22 }
  0x3a   : > { %690 = vmatprep.subr.bf16.mxu0 %v6322_v41  ;;  %5952 = vmatprep.subr.bf16.mxu1 %v6322_v41  ;;  %v6361_v19 = vld [vmem:[%s8104_s1 + $0x110] ss:$8 sps:$4 sm:$0xff]   ;;  %v6366_v20 = vld [vmem:[%s8104_s1 + $0x124] ss:$8 sps:$4 sm:$0xff]   ;;  %v7008_v21 = vpack.c.bf16 %v5240_v18, %v5239_v17  ;;  %v6364_v22 = vld [vmem:[%s8104_s1 + $0x120] ss:$8 sps:$4 sm:$0xff]   ;;  %v7059_v40 = vpack.c.bf16 %v5239_v17, %v6969_v7  ;;  %p6613_p2 = scmp.lt.s32.totalorder %s8061_s30, %s6611_s22 }
  0x3b   : > { %v6369_v24 = vld [vmem:[%s8104_s1 + $0x134] ss:$8 sps:$4 sm:$0xff]   ;;  %v6367_v27 = vld [vmem:[%s8104_s1 + $0x130] ss:$8 sps:$4 sm:$0xff]   ;;  %v6372_v28 = vld [vmem:[%s8104_s1 + $0x144] ss:$8 sps:$4 sm:$0xff]  }
  0x3c   : > { %v5241_v25 = vld [vmem:[%s6912_s12 + $0x50] sm:$0xff]  ;;  %v5242_v26 = vld [vmem:[%s6912_s12 + $0x58] sm:$0xff]  ;;  %v6370_v30 = vld [vmem:[%s8104_s1 + $0x140] ss:$8 sps:$4 sm:$0xff]   ;;  %s6612_s13 = scalar_lea.vmem %s6611_s22, 256 }
  0x3d   : > { %691 = vmatpush1.bf16.msra.mxu0 %v6324_v42  ;;  %5960 = vmatpush1.bf16.msra.mxu1 %v6324_v42  ;;  %v7030_v29 = vpack.c.bf16 %v5242_v26, %v5241_v25  ;;  %v6375_v32 = vld [vmem:[%s8104_s1 + $0x154] ss:$8 sps:$4 sm:$0xff]   ;;  %v5243_v33 = vld [vmem:[%s6912_s12 + $0x60] sm:$0xff]  ;;  %v5244_v35 = vld [vmem:[%s6912_s12 + $0x68] sm:$0xff] }
  0x3e   : > { %692 = vmatprep.subr.bf16.mxu0 %v6325_v43  ;;  %5953 = vmatprep.subr.bf16.mxu1 %v6325_v43  ;;  %v6373_v36 = vld [vmem:[%s8104_s1 + $0x150] ss:$8 sps:$4 sm:$0xff]   ;;  %v6378_v37 = vld [vmem:[%s8104_s1 + $0x164] ss:$8 sps:$4 sm:$0xff]   ;;  %v7052_v38 = vpack.c.bf16 %v5244_v35, %v5243_v33  ;;  %v6376_v39 = vld [vmem:[%s8104_s1 + $0x160] ss:$8 sps:$4 sm:$0xff]  }
  0x3f   : > { %v6381_v41 = vld [vmem:[%s8104_s1 + $0x174] ss:$8 sps:$4 sm:$0xff]   ;;  %v5248_v49 = vld [vmem:[%s6912_s12 + $0x88] sm:$0xff]  ;;  %v5251_v56 = vld [vmem:[%s6912_s12 + $0xa0] sm:$0xff] }
  0x40   : > { %v5245_v42 = vld [vmem:[%s6912_s12 + $0x70] sm:$0xff]  ;;  %v5246_v43 = vld [vmem:[%s6912_s12 + $0x78] sm:$0xff]  ;;  %v5252_v57 = vld [vmem:[%s6912_s12 + $0xa8] sm:$0xff] }
  0x41   : > { %693 = vmatpush1.bf16.msra.mxu0 %v6327_v44  ;;  %5961 = vmatpush1.bf16.msra.mxu1 %v6327_v44  ;;  %v6379_v44 = vld [vmem:[%s8104_s1 + $0x170] ss:$8 sps:$4 sm:$0xff]  }
  0x42   : > { %694 = vmatprep.subr.bf16.mxu0 %v6328_v45  ;;  %5954 = vmatprep.subr.bf16.mxu1 %v6328_v45  ;;  %v6384_v45 = vld [vmem:[%s8104_s1 + $0x184] ss:$8 sps:$4 sm:$0xff]   ;;  %v5257_v6 = vld [vmem:[%s6912_s12 + $0xd0] sm:$0xff]  ;;  %v5258_v7 = vld [vmem:[%s6912_s12 + $0xd8] sm:$0xff] }
  0x43   : > { %v6385_v17 = vld [vmem:[%s8104_s1 + $0x190] ss:$8 sps:$4 sm:$0xff]  }
  0x45   : > { %695 = vmatpush1.bf16.msra.mxu0 %v6330_v46  ;;  %5962 = vmatpush1.bf16.msra.mxu1 %v6330_v46  ;;  %v7075_v46 = vpack.c.bf16 %v5246_v43, %v5245_v42 }
  0x46   : > { %696 = vmatprep.subr.bf16.mxu0 %v6331_v47  ;;  %5955 = vmatprep.subr.bf16.mxu1 %v6331_v47  ;;  %v7078_v47 = vpack.c.bf16 %v5241_v25, %v5240_v18  ;;  %v6390_v18 = vld [vmem:[%s8104_s1 + $0x1a4] ss:$8 sps:$4 sm:$0xff]   ;;  %v6399_v25 = vld [vmem:[%s8104_s1 + $0x1d4] ss:$8 sps:$4 sm:$0xff]  }
  0x49   : > { %697 = vmatpush1.bf16.msra.mxu0 %v6333_v48  ;;  %5963 = vmatpush1.bf16.msra.mxu1 %v6333_v48  ;;  %v5247_v48 = vld [vmem:[%s6912_s12 + $0x80] sm:$0xff] }
  0x4a   : > { %1051 = vmatprep.subr.bf16.mxu0 %v6336_v51  ;;  %v7085_v50 = vpack.c.bf16 %v5248_v49, %v5247_v48  ;;  %v7088_v51 = vpack.c.bf16 %v5243_v33, %v5242_v26  ;;  %v6397_v26 = vld [vmem:[%s8104_s1 + $0x1d0] ss:$8 sps:$4 sm:$0xff]   ;;  %v6408_v33 = vld [vmem:[%s8104_s1 + $0x204] ss:$8 sps:$4 sm:$0xff]  }
  0x4c   : > { %715 = vmatmul.mubr.bf16.vlgmr.msra.gmra.mrb[0].mxu0 %v572_v52  ;;  %755 = vmatmul.mubr.bf16.vlgmr.msra.gmra.mrb[0].mxu1 %v7008_v21  ;;  %v5249_v52 = vld [vmem:[%s6912_s12 + $0x90] sm:$0xff] }
  0x4d   : > { %1052 = vmatpush1.bf16.msra.mxu0 %v6334_v53  ;;  %724 = vmatprep.mubr.bf16.mxu0 %v6670_v34  ;;  %v5250_v53 = vld [vmem:[%s6912_s12 + $0x98] sm:$0xff]  ;;  %v7118_v0 = vpack.c.bf16 %v5249_v52, %v5248_v49 }
  0x4e   : > { %1053 = vmatprep.subr.bf16.mxu0 %v6339_v54  ;;  %764 = vmatprep.mubr.bf16.mxu1 %v6670_v34  ;;  %v7095_v54 = vpack.c.bf16 %v5250_v53, %v5249_v52  ;;  %v6421_v49 = vld [vmem:[%s8104_s1 + $0x250] ss:$8 sps:$4 sm:$0xff]   ;;  %v6426_v52 = vld [vmem:[%s8104_s1 + $0x264] ss:$8 sps:$4 sm:$0xff]  }
  0x51   : > { %1054 = vmatpush1.bf16.msra.mxu0 %v6337_v55  ;;  %v7098_v55 = vpack.c.bf16 %v5245_v42, %v5244_v35  ;;  %v7234_v35 = vld [vmem:[%s6912_s12 + $0xe8] sm:$0xff] }
  0x52   : > { %1055 = vmatprep.subr.bf16.mxu0 %v6342_v58  ;;  %v7105_v58 = vpack.c.bf16 %v5252_v57, %v5251_v56  ;;  %v6414_v42 = vld [vmem:[%s8104_s1 + $0x224] ss:$8 sps:$4 sm:$0xff]  }
  0x54   : > { %725 = vmatmul.mubr.bf16.gmra.mrb[4].mxu0 %v6937_v59  ;;  %765 = vmatmul.mubr.bf16.gmra.mrb[4].mxu1 %v7030_v29 }
  0x55   : > { %1056 = vmatpush1.bf16.msra.mxu0 %v6340_v60  ;;  %734 = vmatprep.mubr.bf16.mxu0 %v6670_v34  ;;  %v7108_v60 = vpack.c.bf16 %v5247_v48, %v5246_v43  ;;  %v6412_v43 = vld [vmem:[%s8104_s1 + $0x220] ss:$8 sps:$4 sm:$0xff]  }
  0x56   : > { %1057 = vmatprep.subr.bf16.mxu0 %v6345_v61  ;;  %774 = vmatprep.mubr.bf16.mxu1 %v6670_v34  ;;  %v5253_v61 = vld [vmem:[%s6912_s12 + $0xb0] sm:$0xff]  ;;  %v6418_v48 = vld [vmem:[%s8104_s1 + $0x240] ss:$8 sps:$4 sm:$0xff]  }
  0x59   : > { %1058 = vmatpush1.bf16.msra.mxu0 %v6343_v62  ;;  %v5254_v62 = vld [vmem:[%s6912_s12 + $0xb8] sm:$0xff] }
  0x5a   : > { %1059 = vmatprep.subr.bf16.mxu0 %v6348_v1  ;;  %v7115_v63 = vpack.c.bf16 %v5254_v62, %v5253_v61  ;;  %v5255_v1 = vld [vmem:[%s6912_s12 + $0xc0] sm:$0xff] }
  0x5c   : > { %735 = vmatmul.mubr.bf16.gmra.mrb[8].mxu0 %v6958_v3  ;;  %775 = vmatmul.mubr.bf16.gmra.mrb[8].mxu1 %v7052_v38 }
  0x5d   : > { %1060 = vmatpush1.bf16.msra.mxu0 %v6346_v2  ;;  %744 = vmatprep.mubr.bf16.mxu0 %v6670_v34  ;;  %v5256_v2 = vld [vmem:[%s6912_s12 + $0xc8] sm:$0xff] }
  0x5e   : > { %1061 = vmatprep.subr.bf16.mxu0 %v6351_v4  ;;  %784 = vmatprep.mubr.bf16.mxu1 %v6670_v34  ;;  %v7125_v4 = vpack.c.bf16 %v5256_v2, %v5255_v1 }
  0x61   : > { %1062 = vmatpush1.bf16.msra.mxu0 %v6349_v5  ;;  %v7128_v5 = vpack.c.bf16 %v5251_v56, %v5250_v53  ;;  %v6424_v53 = vld [vmem:[%s8104_s1 + $0x260] ss:$8 sps:$4 sm:$0xff]   ;;  %v6427_v56 = vld [vmem:[%s8104_s1 + $0x270] ss:$8 sps:$4 sm:$0xff]  }
  0x62   : > { %1063 = vmatprep.subr.bf16.mxu0 %v6354_v8  ;;  %v7135_v8 = vpack.c.bf16 %v5258_v7, %v5257_v6 }
  0x64   : > { %745 = vmatmul.mubr.bf16.gmra.mrb[12].mxu0 %v6979_v10  ;;  %785 = vmatmul.mubr.bf16.gmra.mrb[12].mxu1 %v7075_v46 }
  0x65   : > { %1064 = vmatpush1.bf16.msra.mxu0 %v6352_v9  ;;  %1083 = vmatprep.mubr.bf16.mxu0 %v6670_v34  ;;  %v7138_v9 = vpack.c.bf16 %v5253_v61, %v5252_v57  ;;  %v6433_v57 = vld [vmem:[%s8106_s3 + $0x10] ss:$8 sps:$4 sm:$0xff]   ;;  %v6436_v61 = vld [vmem:[%s8106_s3 + $0x20] ss:$8 sps:$4 sm:$0xff]  }
  0x66   : > { %1065 = vmatprep.subr.bf16.mxu0 %v6357_v11  ;;  %794 = vmatprep.mubr.bf16.mxu1 %v6670_v34  ;;  %v7143_v11 = vpack.c.bf16 %v5255_v1, %v5254_v62  ;;  %v5379_v62 = vld [vmem:[%s6912_s12 + $0xf0] sm:$0xff] }
  0x69   : > { %1066 = vmatpush1.bf16.msra.mxu0 %v6355_v12  ;;  %v7147_v12 = vpack.c.bf16 %v5257_v6, %v5256_v2  ;;  %v6451_v2 = vld [vmem:[%s8106_s3 + $0x70] ss:$8 sps:$4 sm:$0xff]  }
  0x6a   : > { %1532 = vmatprep.subr.bf16.mxu0 %v6360_v13  ;;  %v7152_v13 = vld [vmem:[%s6912_s12 + $0xe0] sm:$0xff] }
  0x6c   : > { %1084 = vmatmul.mubr.bf16.vlgmr.msra.gmra.mrb[0].mxu0 %v940_v15  ;;  %795 = vmatmul.mubr.bf16.gmra.mrb[16].mxu1 %v7085_v50  ;;  %v6382_v15 = vld [vmem:[%s8104_s1 + $0x180] ss:$8 sps:$4 sm:$0xff]  }
  0x6d   : > { %1533 = vmatpush1.bf16.msra.mxu0 %v6358_v14  ;;  %1093 = vmatprep.mubr.bf16.mxu0 %v6670_v34  ;;  %v7155_v14 = vpack.c.bf16 %v7152_v13, %v5258_v7 }
  0x6e   : > { %1534 = vmatprep.subr.bf16.mxu0 %v6363_v16  ;;  %804 = vmatprep.mubr.bf16.mxu1 %v6670_v34  ;;  %v6387_v16 = vld [vmem:[%s8104_s1 + $0x194] ss:$8 sps:$4 sm:$0xff]  }
  0x71   : > { %1535 = vmatpush1.bf16.msra.mxu0 %v6361_v19  ;;  %v6388_v19 = vld [vmem:[%s8104_s1 + $0x1a0] ss:$8 sps:$4 sm:$0xff]  }
  0x72   : > { %1536 = vmatprep.subr.bf16.mxu0 %v6366_v20  ;;  %v6391_v20 = vld [vmem:[%s8104_s1 + $0x1b0] ss:$8 sps:$4 sm:$0xff]  }
  0x74   : > { %1094 = vmatmul.mubr.bf16.gmra.mrb[4].mxu0 %v7014_v23  ;;  %805 = vmatmul.mubr.bf16.gmra.mrb[20].mxu1 %v7095_v54 }
  0x75   : > { %1103 = vmatprep.mubr.bf16.mxu0 %v6670_v34  ;;  %1537 = vmatpush1.bf16.msra.mxu0 %v6364_v22  ;;  %v6396_v22 = vld [vmem:[%s8104_s1 + $0x1c4] ss:$8 sps:$4 sm:$0xff]  }
  0x76   : > { %1538 = vmatprep.subr.bf16.mxu0 %v6369_v24  ;;  %814 = vmatprep.mubr.bf16.mxu1 %v6670_v34  ;;  %v6394_v24 = vld [vmem:[%s8104_s1 + $0x1c0] ss:$8 sps:$4 sm:$0xff]  }
  0x79   : > { %1539 = vmatpush1.bf16.msra.mxu0 %v6367_v27  ;;  %v6402_v27 = vld [vmem:[%s8104_s1 + $0x1e4] ss:$8 sps:$4 sm:$0xff]  }
  0x7a   : > { %1540 = vmatprep.subr.bf16.mxu0 %v6372_v28  ;;  %v6400_v28 = vld [vmem:[%s8104_s1 + $0x1e0] ss:$8 sps:$4 sm:$0xff]  }
  0x7c   : > { %1104 = vmatmul.mubr.bf16.gmra.mrb[8].mxu0 %v7036_v31  ;;  %815 = vmatmul.mubr.bf16.gmra.mrb[24].mxu1 %v7105_v58 }
  0x7d   : > { %1113 = vmatprep.mubr.bf16.mxu0 %v6670_v34  ;;  %1541 = vmatpush1.bf16.msra.mxu0 %v6370_v30  ;;  %v6405_v30 = vld [vmem:[%s8104_s1 + $0x1f4] ss:$8 sps:$4 sm:$0xff]  }
  0x7e   : > { %1542 = vmatprep.subr.bf16.mxu0 %v6375_v32  ;;  %824 = vmatprep.mubr.bf16.mxu1 %v6670_v34  ;;  %v6403_v32 = vld [vmem:[%s8104_s1 + $0x1f0] ss:$8 sps:$4 sm:$0xff]  }
  0x81   : > { %1543 = vmatpush1.bf16.msra.mxu0 %v6373_v36  ;;  %v7238_v36 = vpack.c.bf16 %v7234_v35, %v7152_v13 }
  0x82   : > { %1544 = vmatprep.subr.bf16.mxu0 %v6378_v37  ;;  %v6406_v37 = vld [vmem:[%s8104_s1 + $0x200] ss:$8 sps:$4 sm:$0xff]  }
  0x84   : > { %1114 = vmatmul.mubr.bf16.gmra.mrb[12].mxu0 %v7059_v40  ;;  %825 = vmatmul.mubr.bf16.gmra.mrb[28].mxu1 %v7115_v63 }
  0x85   : > { %1123 = vmatprep.mubr.bf16.mxu0 %v6670_v34  ;;  %1545 = vmatpush1.bf16.msra.mxu0 %v6376_v39  ;;  %v6411_v39 = vld [vmem:[%s8104_s1 + $0x214] ss:$8 sps:$4 sm:$0xff]  }
  0x86   : > { %1546 = vmatprep.subr.bf16.mxu0 %v6381_v41  ;;  %834 = vmatprep.mubr.bf16.mxu1 %v6670_v34  ;;  %v6409_v41 = vld [vmem:[%s8104_s1 + $0x210] ss:$8 sps:$4 sm:$0xff]  }
  0x89   : > { %1547 = vmatpush1.bf16.msra.mxu0 %v6379_v44  ;;  %v6415_v44 = vld [vmem:[%s8104_s1 + $0x230] ss:$8 sps:$4 sm:$0xff]  }
  0x8a   : > { %2013 = vmatprep.subr.bf16.mxu0 %v6384_v45  ;;  %v6420_v45 = vld [vmem:[%s8104_s1 + $0x244] ss:$8 sps:$4 sm:$0xff]  }
  0x8c   : > { %1124 = vmatmul.mubr.bf16.gmra.mrb[16].mxu0 %v7078_v47  ;;  %835 = vmatmul.mubr.bf16.gmra.mrb[32].mxu1 %v7125_v4 }
  0x8d   : > { %1133 = vmatprep.mubr.bf16.mxu0 %v6670_v34  ;;  %844 = vmatprep.mubr.bf16.mxu1 %v6670_v34 }
  0x94   : > { %1134 = vmatmul.mubr.bf16.gmra.mrb[20].mxu0 %v7088_v51  ;;  %845 = vmatmul.mubr.bf16.gmra.mrb[36].mxu1 %v7135_v8 }
  0x95   : > { %1143 = vmatprep.mubr.bf16.mxu0 %v6670_v34  ;;  %3182 = vmatprep.mubr.bf16.mxu1 %v6670_v34 }
  0x9c   : > { %1144 = vmatmul.mubr.bf16.gmra.mrb[24].mxu0 %v7098_v55 }
  0x9d   : > { %1153 = vmatprep.mubr.bf16.mxu0 %v6670_v34 }
  0xa4   : > { %1154 = vmatmul.mubr.bf16.gmra.mrb[28].mxu0 %v7108_v60 }
  0xa5   : > { %1163 = vmatprep.mubr.bf16.mxu0 %v6670_v34 }
  0xac   : > { %1164 = vmatmul.mubr.bf16.gmra.mrb[32].mxu0 %v7118_v0 }
  0xad   : > { %1173 = vmatprep.mubr.bf16.mxu0 %v6670_v34 }
  0xb4   : > { %1174 = vmatmul.mubr.bf16.gmra.mrb[36].mxu0 %v7128_v5 }
  0xb5   : > { %1183 = vmatprep.mubr.bf16.mxu0 %v6670_v34 }
  0xbc   : > { %1184 = vmatmul.mubr.bf16.gmra.mrb[40].mxu0 %v7138_v9 }
  0xbd   : > { %1193 = vmatprep.mubr.bf16.mxu0 %v6670_v34 }
  0xc4   : > { %1194 = vmatmul.mubr.bf16.gmra.mrb[44].mxu0 %v7143_v11 }
  0xc5   : > { %1203 = vmatprep.mubr.bf16.mxu0 %v6670_v34 }
  0xcc   : > { %1204 = vmatmul.mubr.bf16.gmra.mrb[48].mxu0 %v7147_v12 }
  0xcd   : > { %1213 = vmatprep.mubr.bf16.mxu0 %v6670_v34 }
  0xd4   : > { %1214 = vmatmul.mubr.bf16.gmra.mrb[52].mxu0 %v7155_v14 }
  0xd5   : > { %1564 = vmatprep.mubr.bf16.mxu0 %v6670_v34 }
  0xdc   : > { %1565 = vmatmul.mubr.bf16.vlgmr.msra.gmra.mrb[0].mxu0 %v6937_v59  ;;  %v6393_v59 = vld [vmem:[%s8104_s1 + $0x1b4] ss:$8 sps:$4 sm:$0xff]  }
  0xdd   : > { %2014 = vmatpush1.bf16.msra.mxu0 %v6382_v15  ;;  %1574 = vmatprep.mubr.bf16.mxu0 %v6670_v34 }
  0xde   : > { %2015 = vmatprep.subr.bf16.mxu0 %v6387_v16 }
  0xe1   : > { %2016 = vmatpush1.bf16.msra.mxu0 %v6385_v17 }
  0xe2   : > { %2017 = vmatprep.subr.bf16.mxu0 %v6390_v18 }
  0xe4   : > { %1575 = vmatmul.mubr.bf16.gmra.mrb[4].mxu0 %v6958_v3 }
  0xe5   : > { %1584 = vmatprep.mubr.bf16.mxu0 %v6670_v34  ;;  %2018 = vmatpush1.bf16.msra.mxu0 %v6388_v19 }
  0xe6   : > { %2019 = vmatprep.subr.bf16.mxu0 %v6393_v59 }
  0xe9   : > { %2020 = vmatpush1.bf16.msra.mxu0 %v6391_v20  ;;  %v6456_v20 = vld [vmem:[%s8106_s3 + $0x84] ss:$8 sps:$4 sm:$0xff]  }
  0xea   : > { %2021 = vmatprep.subr.bf16.mxu0 %v6396_v22 }
  0xec   : > { %1585 = vmatmul.mubr.bf16.gmra.mrb[8].mxu0 %v6979_v10 }
  0xed   : > { %1594 = vmatprep.mubr.bf16.mxu0 %v6670_v34  ;;  %2022 = vmatpush1.bf16.msra.mxu0 %v6394_v24 }
  0xee   : > { %2023 = vmatprep.subr.bf16.mxu0 %v6399_v25 }
  0xf1   : > { %2024 = vmatpush1.bf16.msra.mxu0 %v6397_v26 }
  0xf2   : > { %2025 = vmatprep.subr.bf16.mxu0 %v6402_v27 }
  0xf4   : > { %1595 = vmatmul.mubr.bf16.gmra.mrb[12].mxu0 %v7008_v21 }
  0xf5   : > { %1604 = vmatprep.mubr.bf16.mxu0 %v6670_v34  ;;  %2026 = vmatpush1.bf16.msra.mxu0 %v6400_v28 }
  0xf6   : > { %2027 = vmatprep.subr.bf16.mxu0 %v6405_v30 }
  0xf9   : > { %2028 = vmatpush1.bf16.msra.mxu0 %v6403_v32 }
  0xfa   : > { %2494 = vmatprep.subr.bf16.mxu0 %v6408_v33 }
  0xfc   : > { %1605 = vmatmul.mubr.bf16.gmra.mrb[16].mxu0 %v7030_v29 }
  0xfd   : > { %1614 = vmatprep.mubr.bf16.mxu0 %v6670_v34 }
 0x104   : > { %1615 = vmatmul.mubr.bf16.gmra.mrb[20].mxu0 %v7052_v38 }
 0x105   : > { %1624 = vmatprep.mubr.bf16.mxu0 %v6670_v34 }
 0x10c   : > { %1625 = vmatmul.mubr.bf16.gmra.mrb[24].mxu0 %v7075_v46 }
 0x10d   : > { %1634 = vmatprep.mubr.bf16.mxu0 %v6670_v34 }
 0x114   : > { %1635 = vmatmul.mubr.bf16.gmra.mrb[28].mxu0 %v7085_v50 }
 0x115   : > { %1644 = vmatprep.mubr.bf16.mxu0 %v6670_v34 }
 0x11c   : > { %1645 = vmatmul.mubr.bf16.gmra.mrb[32].mxu0 %v7095_v54 }
 0x11d   : > { %1654 = vmatprep.mubr.bf16.mxu0 %v6670_v34 }
 0x124   : > { %1655 = vmatmul.mubr.bf16.gmra.mrb[36].mxu0 %v7105_v58 }
 0x125   : > { %1664 = vmatprep.mubr.bf16.mxu0 %v6670_v34 }
 0x12c   : > { %1665 = vmatmul.mubr.bf16.gmra.mrb[40].mxu0 %v7115_v63 }
 0x12d   : > { %1674 = vmatprep.mubr.bf16.mxu0 %v6670_v34 }
 0x134   : > { %1675 = vmatmul.mubr.bf16.gmra.mrb[44].mxu0 %v7125_v4 }
 0x135   : > { %1684 = vmatprep.mubr.bf16.mxu0 %v6670_v34 }
 0x13c   : > { %1685 = vmatmul.mubr.bf16.gmra.mrb[48].mxu0 %v7135_v8 }
 0x13d   : > { %1694 = vmatprep.mubr.bf16.mxu0 %v6670_v34 }
 0x144   : > { %1695 = vmatmul.mubr.bf16.gmra.mrb[52].mxu0 %v7238_v36 }
 0x145   : > { %2045 = vmatprep.mubr.bf16.mxu0 %v6670_v34 }
 0x14c   : > { %2046 = vmatmul.mubr.bf16.vlgmr.msra.gmra.mrb[0].mxu0 %v7014_v23  ;;  %v6417_v23 = vld [vmem:[%s8104_s1 + $0x234] ss:$8 sps:$4 sm:$0xff]  }
 0x14d   : > { %2495 = vmatpush1.bf16.msra.mxu0 %v6406_v37  ;;  %2055 = vmatprep.mubr.bf16.mxu0 %v6670_v34 }
 0x14e   : > { %2496 = vmatprep.subr.bf16.mxu0 %v6411_v39 }
 0x151   : > { %2497 = vmatpush1.bf16.msra.mxu0 %v6409_v41 }
 0x152   : > { %2498 = vmatprep.subr.bf16.mxu0 %v6414_v42 }
 0x154   : > { %2056 = vmatmul.mubr.bf16.gmra.mrb[4].mxu0 %v7036_v31  ;;  %v6423_v31 = vld [vmem:[%s8104_s1 + $0x254] ss:$8 sps:$4 sm:$0xff]  }
 0x155   : > { %2065 = vmatprep.mubr.bf16.mxu0 %v6670_v34  ;;  %2499 = vmatpush1.bf16.msra.mxu0 %v6412_v43 }
 0x156   : > { %2500 = vmatprep.subr.bf16.mxu0 %v6417_v23 }
 0x159   : > { %2501 = vmatpush1.bf16.msra.mxu0 %v6415_v44 }
 0x15a   : > { %2502 = vmatprep.subr.bf16.mxu0 %v6420_v45 }
 0x15c   : > { %2066 = vmatmul.mubr.bf16.gmra.mrb[8].mxu0 %v7059_v40  ;;  %v6429_v40 = vld [vmem:[%s8104_s1 + $0x274] ss:$8 sps:$4 sm:$0xff]  }
 0x15d   : > { %2075 = vmatprep.mubr.bf16.mxu0 %v6670_v34  ;;  %2503 = vmatpush1.bf16.msra.mxu0 %v6418_v48 }
 0x15e   : > { %2504 = vmatprep.subr.bf16.mxu0 %v6423_v31 }
 0x161   : > { %2505 = vmatpush1.bf16.msra.mxu0 %v6421_v49 }
 0x162   : > { %2506 = vmatprep.subr.bf16.mxu0 %v6426_v52 }
 0x164   : > { %2076 = vmatmul.mubr.bf16.gmra.mrb[12].mxu0 %v7078_v47  ;;  %v6430_v47 = vld [vmem:[%s8106_s3] ss:$8 sps:$4 sm:$0xff]  }
 0x165   : > { %2085 = vmatprep.mubr.bf16.mxu0 %v6670_v34  ;;  %2507 = vmatpush1.bf16.msra.mxu0 %v6424_v53 }
 0x166   : > { %2508 = vmatprep.subr.bf16.mxu0 %v6429_v40 }
 0x169   : > { %2509 = vmatpush1.bf16.msra.mxu0 %v6427_v56 }
 0x16c   : > { %2086 = vmatmul.mubr.bf16.gmra.mrb[16].mxu0 %v7088_v51  ;;  %v6432_v51 = vld [vmem:[%s8106_s3 + $0x4] ss:$8 sps:$4 sm:$0xff]  }
 0x16d   : > { %2095 = vmatprep.mubr.bf16.mxu0 %v6670_v34  ;;  %3150 = vmatprep.subr.bf16.mxu1 %v6432_v51 }
 0x16e   : > { %3151 = vmatpush1.bf16.msra.mxu1 %v6430_v47 }
 0x174   : > { %2096 = vmatmul.mubr.bf16.gmra.mrb[20].mxu0 %v7098_v55  ;;  %v6435_v55 = vld [vmem:[%s8106_s3 + $0x14] ss:$8 sps:$4 sm:$0xff]  }
 0x175   : > { %2105 = vmatprep.mubr.bf16.mxu0 %v6670_v34  ;;  %3152 = vmatprep.subr.bf16.mxu1 %v6435_v55 }
 0x176   : > { %3153 = vmatpush1.bf16.msra.mxu1 %v6433_v57 }
 0x17c   : > { %2106 = vmatmul.mubr.bf16.gmra.mrb[24].mxu0 %v7108_v60  ;;  %v6438_v60 = vld [vmem:[%s8106_s3 + $0x24] ss:$8 sps:$4 sm:$0xff]  }
 0x17d   : > { %2115 = vmatprep.mubr.bf16.mxu0 %v6670_v34  ;;  %3154 = vmatprep.subr.bf16.mxu1 %v6438_v60 }
 0x17e   : > { %3155 = vmatpush1.bf16.msra.mxu1 %v6436_v61 }
 0x184   : > { %2116 = vmatmul.mubr.bf16.gmra.mrb[28].mxu0 %v7118_v0  ;;  %v1915_v0 = vpack.c.bf16 %v5379_v62, %v7234_v35 }
 0x185   : > { %2125 = vmatprep.mubr.bf16.mxu0 %v6670_v34 }
 0x18c   : > { %2126 = vmatmul.mubr.bf16.gmra.mrb[32].mxu0 %v7128_v5 }
 0x18d   : > { %2135 = vmatprep.mubr.bf16.mxu0 %v6670_v34 }
 0x194   : > { %2136 = vmatmul.mubr.bf16.gmra.mrb[36].mxu0 %v7138_v9 }
 0x195   : > { %2145 = vmatprep.mubr.bf16.mxu0 %v6670_v34 }
 0x19c   : > { %2146 = vmatmul.mubr.bf16.gmra.mrb[40].mxu0 %v7143_v11 }
 0x19d   : > { %2155 = vmatprep.mubr.bf16.mxu0 %v6670_v34 }
 0x1a4   : > { %2156 = vmatmul.mubr.bf16.gmra.mrb[44].mxu0 %v7147_v12 }
 0x1a5   : > { %2165 = vmatprep.mubr.bf16.mxu0 %v6670_v34 }
 0x1ac   : > { %2166 = vmatmul.mubr.bf16.gmra.mrb[48].mxu0 %v7155_v14 }
 0x1ad   : > { %2175 = vmatprep.mubr.bf16.mxu0 %v6670_v34 }
 0x1b4   : > { %2176 = vmatmul.mubr.bf16.gmra.mrb[52].mxu0 %v1915_v0 }
 0x1b5   : > { %2526 = vmatprep.mubr.bf16.mxu0 %v6670_v34 }
 0x1bc   : > { %2527 = vmatmul.mubr.bf16.vlgmr.msra.gmra.mrb[0].mxu0 %v6958_v3  ;;  %v6441_v3 = vld [vmem:[%s8106_s3 + $0x34] ss:$8 sps:$4 sm:$0xff]  }
 0x1bd   : > { %2536 = vmatprep.mubr.bf16.mxu0 %v6670_v34  ;;  %3156 = vmatprep.subr.bf16.mxu1 %v6441_v3 }
 0x1c4   : > { %2537 = vmatmul.mubr.bf16.gmra.mrb[4].mxu0 %v6979_v10  ;;  %v6439_v10 = vld [vmem:[%s8106_s3 + $0x30] ss:$8 sps:$4 sm:$0xff]  }
 0x1c5   : > { %2546 = vmatprep.mubr.bf16.mxu0 %v6670_v34  ;;  %3157 = vmatpush1.bf16.msra.mxu1 %v6439_v10  ;;  %v7477_v10 = vld [vmem:[%s8105_s2] ss:$0 sm:$0xff] }
 0x1cc   : > { %2547 = vmatmul.mubr.bf16.gmra.mrb[8].mxu0 %v7008_v21  ;;  %v6444_v21 = vld [vmem:[%s8106_s3 + $0x44] ss:$8 sps:$4 sm:$0xff]  }
 0x1cd   : > { %2556 = vmatprep.mubr.bf16.mxu0 %v6670_v34  ;;  %3158 = vmatprep.subr.bf16.mxu1 %v6444_v21 }
 0x1d4   : > { %2557 = vmatmul.mubr.bf16.gmra.mrb[12].mxu0 %v7030_v29  ;;  %v6442_v29 = vld [vmem:[%s8106_s3 + $0x40] ss:$8 sps:$4 sm:$0xff]  }
 0x1d5   : > { %2566 = vmatprep.mubr.bf16.mxu0 %v6670_v34  ;;  %3159 = vmatpush1.bf16.msra.mxu1 %v6442_v29 }
 0x1dc   : > { %2567 = vmatmul.mubr.bf16.gmra.mrb[16].mxu0 %v7052_v38  ;;  %v6447_v38 = vld [vmem:[%s8106_s3 + $0x54] ss:$8 sps:$4 sm:$0xff]  }
 0x1dd   : > { %2576 = vmatprep.mubr.bf16.mxu0 %v6670_v34  ;;  %3160 = vmatprep.subr.bf16.mxu1 %v6447_v38 }
 0x1e4   : > { %2577 = vmatmul.mubr.bf16.gmra.mrb[20].mxu0 %v7075_v46  ;;  %v6445_v46 = vld [vmem:[%s8106_s3 + $0x50] ss:$8 sps:$4 sm:$0xff]  }
 0x1e5   : > { %2586 = vmatprep.mubr.bf16.mxu0 %v6670_v34  ;;  %3161 = vmatpush1.bf16.msra.mxu1 %v6445_v46 }
 0x1ec   : > { %2587 = vmatmul.mubr.bf16.gmra.mrb[24].mxu0 %v7085_v50  ;;  %v6450_v50 = vld [vmem:[%s8106_s3 + $0x64] ss:$8 sps:$4 sm:$0xff]  }
 0x1ed   : > { %2596 = vmatprep.mubr.bf16.mxu0 %v6670_v34  ;;  %3162 = vmatprep.subr.bf16.mxu1 %v6450_v50 }
 0x1f4   : > { %2597 = vmatmul.mubr.bf16.gmra.mrb[28].mxu0 %v7095_v54  ;;  %v6448_v54 = vld [vmem:[%s8106_s3 + $0x60] ss:$8 sps:$4 sm:$0xff]  }
 0x1f5   : > { %2606 = vmatprep.mubr.bf16.mxu0 %v6670_v34  ;;  %3163 = vmatpush1.bf16.msra.mxu1 %v6448_v54 }
 0x1fc   : > { %2607 = vmatmul.mubr.bf16.gmra.mrb[32].mxu0 %v7105_v58  ;;  %v5439_v58 = vld [vmem:[%s6912_s12 + $0xf8] sm:$0xff]  ;;  %s6606_s12 = scalar_lea.vmem %s8061_s30, 128 }
 0x1fd   : > { %2616 = vmatprep.mubr.bf16.mxu0 %v6670_v34  ;;  %v2396_v1 = vpack.c.bf16 %v5439_v58, %v5379_v62  ;;  %p6607_p13 = scmp.ne.s32.totalorder %s8061_s30, %s6606_s12  ;;  %p6614_p3 = scmp.lt.s32.totalorder %s6612_s13, %s6606_s12 }
 0x1ff   : > { %p6608_p0 = pnand %p6607_p13, %p6772_p6  ;;  %p6615_p4 = por %p6614_p3, %p6613_p2 }
 0x201   : > { %p6609_p1 = pneg %p6608_p0 }
 0x203   : > { %p6616_p5 = pnand %p6615_p4, %p6609_p1 }
 0x204   : > { %2617 = vmatmul.mubr.bf16.gmra.mrb[36].mxu0 %v7115_v63  ;;  %v6453_v63 = vld [vmem:[%s8106_s3 + $0x74] ss:$8 sps:$4 sm:$0xff]  }
 0x205   : > { %2626 = vmatprep.mubr.bf16.mxu0 %v6670_v34  ;;  %3164 = vmatprep.subr.bf16.mxu1 %v6453_v63 }
 0x206   : > { %3165 = vmatpush1.bf16.msra.mxu1 %v6451_v2 }
 0x207   : > { %3366 = vmatprep.subr.bf16.mxu1 %v6456_v20 }
 0x20c   : > { %2627 = vmatmul.mubr.bf16.gmra.mrb[40].mxu0 %v7125_v4  ;;  %v7391_v4 = vpop.f32.mrb[0].mxu1 }
 0x20d   : > { %2636 = vmatprep.mubr.bf16.mxu0 %v6670_v34  ;;  %v7393_v5 = vpop.f32.mrb[1].mxu1 }
 0x20e   : > { %v7395_v6 = vpop.f32.mrb[2].mxu1 }
 0x20f   : > { %v7397_v7 = vpop.f32.mrb[3].mxu1 }
 0x214   : > { %2637 = vmatmul.mubr.bf16.gmra.mrb[44].mxu0 %v7135_v8  ;;  %v7399_v8 = vpop.f32.mrb[4].mxu1 }
 0x215   : > { %2646 = vmatprep.mubr.bf16.mxu0 %v6670_v34  ;;  %v7401_v9 = vpop.f32.mrb[5].mxu1 }
 0x216   : > { %v7403_v11 = vpop.f32.mrb[6].mxu1 }
 0x217   : > { %v7405_v12 = vpop.f32.mrb[7].mxu1 }
 0x218   : > { %v7407_v13 = vpop.f32.mrb[8].mxu1 }
 0x219   : > { %v7409_v14 = vpop.f32.mrb[9].mxu1 }
 0x21a   : > { %v7411_v15 = vpop.f32.mrb[10].mxu1 }
 0x21b   : > { %v7413_v16 = vpop.f32.mrb[11].mxu1 }
 0x21c   : > { %2647 = vmatmul.mubr.bf16.gmra.mrb[48].mxu0 %v7238_v36  ;;  %v7415_v17 = vpop.f32.mrb[12].mxu1 }
 0x21d   : > { %2656 = vmatprep.mubr.bf16.mxu0 %v6670_v34  ;;  %v7417_v18 = vpop.f32.mrb[13].mxu1 }
 0x21e   : > { %v7419_v19 = vpop.f32.mrb[14].mxu1 }
 0x21f   : > { %v7421_v59 = vpop.f32.mrb[15].mxu1 }
 0x220   : > { %v7426_v22 = vpop.f32.mrb[16].mxu1 }
 0x221   : > { %v7428_v24 = vpop.f32.mrb[17].mxu1 }
 0x222   : > { %v7430_v25 = vpop.f32.mrb[18].mxu1 }
 0x223   : > { %v7432_v26 = vpop.f32.mrb[19].mxu1 }
 0x224   : > { %2657 = vmatmul.mubr.bf16.gmra.mrb[52].mxu0 %v2396_v1  ;;  %v7434_v27 = vpop.f32.mrb[20].mxu1 }
 0x225   : > { %v7436_v28 = vpop.f32.mrb[21].mxu1 }
 0x226   : > { %v7438_v30 = vpop.f32.mrb[22].mxu1 }
 0x227   : > { %v7440_v32 = vpop.f32.mrb[23].mxu1 }
 0x228   : > { %v7442_v33 = vpop.f32.mrb[24].mxu1 }
 0x229   : > { %v7444_v35 = vpop.f32.mrb[25].mxu1 }
 0x22a   : > { %v7446_v36 = vpop.f32.mrb[26].mxu1 }
 0x22b   : > { %v7448_v37 = vpop.f32.mrb[27].mxu1 }
 0x22c   : > { %v7450_v39 = vpop.f32.mrb[28].mxu1 }
 0x22d   : > { %v7452_v41 = vpop.f32.mrb[29].mxu1 }
 0x22e   : > { %v7454_v42 = vpop.f32.mrb[30].mxu1 }
 0x22f   : > { %v7456_v43 = vpop.f32.mrb[31].mxu1 }
 0x230   : > { %v7458_v23 = vpop.f32.mrb[32].mxu1 }
 0x231   : > { %v7460_v44 = vpop.f32.mrb[33].mxu1 }
 0x232   : > { %v7462_v45 = vpop.f32.mrb[34].mxu1 }
 0x233   : > { %v7464_v48 = vpop.f32.mrb[35].mxu1 }
 0x234   : > { %v7466_v31 = vpop.f32.mrb[36].mxu1 }
 0x235   : > { %v7468_v49 = vpop.f32.mrb[37].mxu1 }
 0x236   : > { %v7470_v52 = vpop.f32.mrb[38].mxu1 }
 0x237   : > { %v7472_v53 = vpop.f32.mrb[39].mxu1 }
 0x28f   : > { %v2528_v40 = vpop.f32.mrb[0].mxu0 }
 0x290   : > { %v2530_v56 = vpop.f32.mrb[1].mxu0 }
 0x291   : > { %v2891_v47 = vmax.f32 %v2528_v40, %v2530_v56  ;;  %v2532_v51 = vpop.f32.mrb[2].mxu0  ;;  %v6454_v56 = vld [vmem:[%s8106_s3 + $0x80] ss:$8 sps:$4 sm:$0xff]  }
 0x292   : > { %v2534_v55 = vpop.f32.mrb[3].mxu0 }
 0x293   : > { %v2892_v57 = vmax.f32 %v2532_v51, %v2534_v55  ;;  %v6459_v55 = vld [vmem:[%s8106_s3 + $0x94] ss:$8 sps:$4 sm:$0xff]  }
 0x295   : > { %v2976_v60 = vmax.f32 %v2891_v47, %v2892_v57 }
 0x297   : > { %v2538_v61 = vpop.f32.mrb[4].mxu0  ;;  %v2997_v38 = vadd.f32 %v7477_v10, %v2976_v60  ;;  %v6457_v60 = vld [vmem:[%s8106_s3 + $0x90] ss:$8 sps:$4 sm:$0xff]  }
 0x298   : > { %v2540_v62 = vpop.f32.mrb[5].mxu0 }
 0x299   : > { %v2893_v0 = vmax.f32 %v2538_v61, %v2540_v62  ;;  %v2542_v3 = vpop.f32.mrb[6].mxu0  ;;  %v3011_v63 = vmax.f32 %v2997_v38, 0.0 }
 0x29a   : > { %v2544_v21 = vpop.f32.mrb[7].mxu0 }
 0x29b   : > { %v2894_v29 = vmax.f32 %v2542_v3, %v2544_v21 }
 0x29d   : > { %v2977_v46 = vmax.f32 %v2893_v0, %v2894_v29  ;;  %v6462_v0 = vld [vmem:[%s8106_s3 + $0xa4] ss:$8 sps:$4 sm:$0xff]  }
 0x29f   : > { %v2998_v50 = vadd.f32 %v7477_v10, %v2977_v46  ;;  %v2548_v54 = vpop.f32.mrb[8].mxu0 }
 0x2a0   : > { %v2550_v58 = vpop.f32.mrb[9].mxu0 }
 0x2a1   : > { %v3012_v1 = vmax.f32 %v2998_v50, 0.0  ;;  %v2895_v2 = vmax.f32 %v2548_v54, %v2550_v58  ;;  %v2552_v20 = vpop.f32.mrb[10].mxu0  ;;  %v6460_v50 = vld [vmem:[%s8106_s3 + $0xa0] ss:$8 sps:$4 sm:$0xff]  }
 0x2a2   : > { %v2554_v40 = vpop.f32.mrb[11].mxu0 }
 0x2a3   : > { %v3049_v47 = vpack.c.bf16 %v3012_v1, %v3011_v63  ;;  %v2896_v51 = vmax.f32 %v2552_v20, %v2554_v40  ;;  %v6465_v63 = vld [vmem:[%s8106_s3 + $0xb4] ss:$8 sps:$4 sm:$0xff]   ;;  %v6463_v20 = vld [vmem:[%s8106_s3 + $0xb0] ss:$8 sps:$4 sm:$0xff]  }
 0x2a5   : > { %v2978_v57 = vmax.f32 %v2895_v2, %v2896_v51  ;;  %3183 = vmatmul.mubr.bf16.vlgmr.msra.gmra.mrb[40].mxu1 %v3049_v47 }
 0x2a6   : > { %3192 = vmatprep.mubr.bf16.mxu1 %v6670_v34  ;;  %3367 = vmatpush1.bf16.msra.mxu1 %v6454_v56 }
 0x2a7   : > { %v2999_v61 = vadd.f32 %v7477_v10, %v2978_v57  ;;  %v2558_v62 = vpop.f32.mrb[12].mxu0  ;;  %3368 = vmatprep.subr.bf16.mxu1 %v6459_v55 }
 0x2a8   : > { %v2560_v3 = vpop.f32.mrb[13].mxu0 }
 0x2a9   : > { %v3013_v21 = vmax.f32 %v2999_v61, 0.0  ;;  %v2897_v29 = vmax.f32 %v2558_v62, %v2560_v3  ;;  %v2562_v38 = vpop.f32.mrb[14].mxu0 }
 0x2aa   : > { %v2564_v46 = vpop.f32.mrb[15].mxu0  ;;  %3369 = vmatpush1.bf16.msra.mxu1 %v6457_v60 }
 0x2ab   : > { %v7498_v54 = vpack.c.bf16 %v3013_v21, %v3012_v1  ;;  %v2898_v58 = vmax.f32 %v2562_v38, %v2564_v46  ;;  %3370 = vmatprep.subr.bf16.mxu1 %v6462_v0  ;;  %v6468_v1 = vld [vmem:[%s8106_s3 + $0xc4] ss:$8 sps:$4 sm:$0xff]   ;;  %v6466_v0 = vld [vmem:[%s8106_s3 + $0xc0] ss:$8 sps:$4 sm:$0xff]  }
 0x2ad   : > { %v2979_v2 = vmax.f32 %v2897_v29, %v2898_v58 }
 0x2ae   : > { %3371 = vmatpush1.bf16.msra.mxu1 %v6460_v50 }
 0x2af   : > { %v3000_v40 = vadd.f32 %v7477_v10, %v2979_v2  ;;  %v2568_v56 = vpop.f32.mrb[16].mxu0  ;;  %3372 = vmatprep.subr.bf16.mxu1 %v6465_v63 }
 0x2b0   : > { %v5964_v47 = vadd.f32 %v2568_v56, %v7391_v4  ;;  %v2570_v51 = vpop.f32.mrb[17].mxu0  ;;  %v6471_v4 = vld [vmem:[%s8106_s3 + $0xd4] ss:$8 sps:$4 sm:$0xff]  }
 0x2b1   : > { %v3014_v55 = vmax.f32 %v3000_v40, 0.0  ;;  %v5965_v57 = vadd.f32 %v2570_v51, %v7393_v5  ;;  %v2572_v60 = vpop.f32.mrb[18].mxu0 }
 0x2b2   : > { %v5966_v61 = vadd.f32 %v2572_v60, %v7395_v6  ;;  %v2574_v62 = vpop.f32.mrb[19].mxu0  ;;  %3373 = vmatpush1.bf16.msra.mxu1 %v6463_v20  ;;  %v6469_v6 = vld [vmem:[%s8106_s3 + $0xd0] ss:$8 sps:$4 sm:$0xff]  }
 0x2b3   : > { %v2899_v3 = vmax.f32 %v5964_v47, %v5965_v57  ;;  %v5967_v29 = vadd.f32 %v2574_v62, %v7397_v7  ;;  %v7517_v38 = vpack.c.bf16 %v3014_v55, %v3013_v21  ;;  %3374 = vmatprep.subr.bf16.mxu1 %v6468_v1  ;;  %v6474_v7 = vld [vmem:[%s8106_s3 + $0xe4] ss:$8 sps:$4 sm:$0xff]   ;;  %v6472_v1 = vld [vmem:[%s8106_s3 + $0xe0] ss:$8 sps:$4 sm:$0xff]  }
 0x2b5   : > { %v2900_v5 = vmax.f32 %v5966_v61, %v5967_v29  ;;  %3193 = vmatmul.mubr.bf16.gmra.mrb[44].mxu1 %v7517_v38 }
 0x2b6   : > { %3202 = vmatprep.mubr.bf16.mxu1 %v6670_v34  ;;  %3375 = vmatpush1.bf16.msra.mxu1 %v6466_v0 }
 0x2b7   : > { %v2980_v46 = vmax.f32 %v2899_v3, %v2900_v5  ;;  %v2578_v50 = vpop.f32.mrb[20].mxu0  ;;  %3376 = vmatprep.subr.bf16.mxu1 %v6471_v4 }
 0x2b8   : > { %v5968_v21 = vadd.f32 %v2578_v50, %v7399_v8  ;;  %v2580_v58 = vpop.f32.mrb[21].mxu0  ;;  %v6477_v8 = vld [vmem:[%s8106_s3 + $0xf4] ss:$8 sps:$4 sm:$0xff]  }
 0x2b9   : > { %v5969_v63 = vadd.f32 %v2580_v58, %v7401_v9  ;;  %v2582_v2 = vpop.f32.mrb[22].mxu0  ;;  %v3001_v20 = vadd.f32 %v7477_v10, %v2980_v46 }
 0x2ba   : > { %v5970_v40 = vadd.f32 %v2582_v2, %v7403_v11  ;;  %v2584_v56 = vpop.f32.mrb[23].mxu0  ;;  %3377 = vmatpush1.bf16.msra.mxu1 %v6469_v6  ;;  %v6475_v11 = vld [vmem:[%s8106_s3 + $0xf0] ss:$8 sps:$4 sm:$0xff]  }
 0x2bb   : > { %v2901_v47 = vmax.f32 %v5968_v21, %v5969_v63  ;;  %v5971_v51 = vadd.f32 %v2584_v56, %v7405_v12  ;;  %v3015_v57 = vmax.f32 %v3001_v20, 0.0  ;;  %3378 = vmatprep.subr.bf16.mxu1 %v6474_v7  ;;  %v6480_v12 = vld [vmem:[%s8106_s3 + $0x104] ss:$8 sps:$4 sm:$0xff]  }
 0x2bd   : > { %v2902_v9 = vmax.f32 %v5970_v40, %v5971_v51  ;;  %v7541_v60 = vpack.c.bf16 %v3015_v57, %v3014_v55 }
 0x2be   : > { %3379 = vmatpush1.bf16.msra.mxu1 %v6472_v1 }
 0x2bf   : > { %v2981_v61 = vmax.f32 %v2901_v47, %v2902_v9  ;;  %v2588_v62 = vpop.f32.mrb[24].mxu0  ;;  %3380 = vmatprep.subr.bf16.mxu1 %v6477_v8 }
 0x2c0   : > { %v5972_v0 = vadd.f32 %v2588_v62, %v7407_v13  ;;  %v2590_v3 = vpop.f32.mrb[25].mxu0 }
 0x2c1   : > { %v5973_v29 = vadd.f32 %v2590_v3, %v7409_v14  ;;  %v2592_v4 = vpop.f32.mrb[26].mxu0  ;;  %v3002_v55 = vadd.f32 %v7477_v10, %v2981_v61 }
 0x2c2   : > { %v5974_v5 = vadd.f32 %v2592_v4, %v7411_v15  ;;  %v2594_v6 = vpop.f32.mrb[27].mxu0  ;;  %3381 = vmatpush1.bf16.msra.mxu1 %v6475_v11 }
 0x2c3   : > { %v2903_v46 = vmax.f32 %v5972_v0, %v5973_v29  ;;  %v5975_v50 = vadd.f32 %v2594_v6, %v7413_v16  ;;  %v3016_v7 = vmax.f32 %v3002_v55, 0.0  ;;  %3622 = vmatprep.subr.bf16.mxu1 %v6480_v12 }
 0x2c5   : > { %v2904_v21 = vmax.f32 %v5974_v5, %v5975_v50  ;;  %v7554_v58 = vpack.c.bf16 %v3016_v7, %v3015_v57 }
 0x2c7   : > { %v2982_v63 = vmax.f32 %v2903_v46, %v2904_v21  ;;  %v2598_v13 = vpop.f32.mrb[28].mxu0  ;;  %3203 = vmatmul.mubr.bf16.gmra.mrb[48].mxu1 %v7554_v58 }
 0x2c8   : > { %v5976_v14 = vadd.f32 %v2598_v13, %v7415_v17  ;;  %v2600_v2 = vpop.f32.mrb[29].mxu0  ;;  %3212 = vmatprep.mubr.bf16.mxu1 %v6670_v34 }
 0x2c9   : > { %v5977_v15 = vadd.f32 %v2600_v2, %v7417_v18  ;;  %v2602_v20 = vpop.f32.mrb[30].mxu0  ;;  %v3003_v40 = vadd.f32 %v7477_v10, %v2982_v63 }
 0x2ca   : > { %v5978_v16 = vadd.f32 %v2602_v20, %v7419_v19  ;;  %v2604_v56 = vpop.f32.mrb[31].mxu0 }
 0x2cb   : > { %v2905_v1 = vmax.f32 %v5976_v14, %v5977_v15  ;;  %v5979_v47 = vadd.f32 %v2604_v56, %v7421_v59  ;;  %v3017_v51 = vmax.f32 %v3003_v40, 0.0 }
 0x2cd   : > { %v2906_v57 = vmax.f32 %v5978_v16, %v5979_v47  ;;  %v7563_v8 = vpack.c.bf16 %v3017_v51, %v3016_v7 }
 0x2cf   : > { %v2983_v9 = vmax.f32 %v2905_v1, %v2906_v57  ;;  %v2608_v17 = vpop.f32.mrb[32].mxu0 }
 0x2d0   : > { %v5980_v11 = vadd.f32 %v2608_v17, %v7426_v22  ;;  %v2610_v61 = vpop.f32.mrb[33].mxu0 }
 0x2d1   : > { %v5981_v18 = vadd.f32 %v2610_v61, %v7428_v24  ;;  %v2612_v62 = vpop.f32.mrb[34].mxu0  ;;  %v3004_v12 = vadd.f32 %v7477_v10, %v2983_v9 }
 0x2d2   : > { %v5982_v19 = vadd.f32 %v2612_v62, %v7430_v25  ;;  %v2614_v0 = vpop.f32.mrb[35].mxu0 }
 0x2d3   : > { %v2907_v3 = vmax.f32 %v5980_v11, %v5981_v18  ;;  %v5983_v59 = vadd.f32 %v2614_v0, %v7432_v26  ;;  %v3018_v29 = vmax.f32 %v3004_v12, 0.0 }
 0x2d5   : > { %v2908_v4 = vmax.f32 %v5982_v19, %v5983_v59  ;;  %v7570_v55 = vpack.c.bf16 %v3018_v29, %v3017_v51  ;;  %v6483_v59 = vld [vmem:[%s8106_s3 + $0x114] ss:$8 sps:$4 sm:$0xff]  }
 0x2d7   : > { %v2984_v5 = vmax.f32 %v2907_v3, %v2908_v4  ;;  %v2618_v6 = vpop.f32.mrb[36].mxu0  ;;  %3213 = vmatmul.mubr.bf16.gmra.mrb[52].mxu1 %v7570_v55  ;;  %v6478_v3 = vld [vmem:[%s8106_s3 + $0x100] ss:$8 sps:$4 sm:$0xff]  }
 0x2d8   : > { %v5984_v22 = vadd.f32 %v2618_v6, %v7434_v27  ;;  %v2620_v24 = vpop.f32.mrb[37].mxu0  ;;  %3222 = vmatprep.mubr.bf16.mxu1 %v6670_v34 }
 0x2d9   : > { %v5985_v46 = vadd.f32 %v2620_v24, %v7436_v28  ;;  %v2622_v25 = vpop.f32.mrb[38].mxu0  ;;  %v3005_v50 = vadd.f32 %v7477_v10, %v2984_v5  ;;  %v6486_v24 = vld [vmem:[%s8106_s3 + $0x124] ss:$8 sps:$4 sm:$0xff]  }
 0x2da   : > { %v5986_v26 = vadd.f32 %v2622_v25, %v7438_v30  ;;  %v2624_v7 = vpop.f32.mrb[39].mxu0 }
 0x2db   : > { %v2909_v21 = vmax.f32 %v5984_v22, %v5985_v46  ;;  %v5987_v63 = vadd.f32 %v2624_v7, %v7440_v32  ;;  %v3019_v13 = vmax.f32 %v3005_v50, 0.0 }
 0x2dd   : > { %v2910_v14 = vmax.f32 %v5986_v26, %v5987_v63  ;;  %v7579_v2 = vpack.c.bf16 %v3019_v13, %v3018_v29 }
 0x2df   : > { %v2985_v15 = vmax.f32 %v2909_v21, %v2910_v14  ;;  %v2628_v27 = vpop.f32.mrb[40].mxu0  ;;  %v6489_v21 = vld [vmem:[%s8106_s3 + $0x134] ss:$8 sps:$4 sm:$0xff]  }
 0x2e0   : > { %v5988_v20 = vadd.f32 %v2628_v27, %v7442_v33  ;;  %v2630_v40 = vpop.f32.mrb[41].mxu0 }
 0x2e1   : > { %v5989_v28 = vadd.f32 %v2630_v40, %v7444_v35  ;;  %v2632_v16 = vpop.f32.mrb[42].mxu0  ;;  %v3006_v56 = vadd.f32 %v7477_v10, %v2985_v15  ;;  %v6487_v15 = vld [vmem:[%s8106_s3 + $0x130] ss:$8 sps:$4 sm:$0xff]   ;;  %v6492_v40 = vld [vmem:[%s8106_s3 + $0x144] ss:$8 sps:$4 sm:$0xff]  }
 0x2e2   : > { %v5990_v30 = vadd.f32 %v2632_v16, %v7446_v36  ;;  %v2634_v1 = vpop.f32.mrb[43].mxu0 }
 0x2e3   : > { %v2911_v47 = vmax.f32 %v5988_v20, %v5989_v28  ;;  %v5991_v32 = vadd.f32 %v2634_v1, %v7448_v37  ;;  %v3020_v51 = vmax.f32 %v3006_v56, 0.0 }
 0x2e5   : > { %v2912_v57 = vmax.f32 %v5990_v30, %v5991_v32  ;;  %v7586_v9 = vpack.c.bf16 %v3020_v51, %v3019_v13  ;;  %v6495_v32 = vld [vmem:[%s8106_s3 + $0x154] ss:$8 sps:$4 sm:$0xff]  }
 0x2e7   : > { %v2986_v17 = vmax.f32 %v2911_v47, %v2912_v57  ;;  %v2638_v11 = vpop.f32.mrb[44].mxu0  ;;  %3223 = vmatmul.mubr.bf16.gmra.mrb[56].mxu1 %v7586_v9 }
 0x2e8   : > { %v5992_v33 = vadd.f32 %v2638_v11, %v7450_v39  ;;  %v2640_v35 = vpop.f32.mrb[45].mxu0  ;;  %3398 = vmatprep.mubr.bf16.mxu1 %v6670_v34 }
 0x2e9   : > { %v5993_v61 = vadd.f32 %v2640_v35, %v7452_v41  ;;  %v2642_v36 = vpop.f32.mrb[46].mxu0  ;;  %v3007_v18 = vadd.f32 %v7477_v10, %v2986_v17  ;;  %v6501_v35 = vld [vmem:[%s8106_s3 + $0x174] ss:$8 sps:$4 sm:$0xff]  }
 0x2ea   : > { %v5994_v37 = vadd.f32 %v2642_v36, %v7454_v42  ;;  %v2644_v62 = vpop.f32.mrb[47].mxu0  ;;  %v6504_v36 = vld [vmem:[%s8106_s3 + $0x184] ss:$8 sps:$4 sm:$0xff]  }
 0x2eb   : > { %v2913_v12 = vmax.f32 %v5992_v33, %v5993_v61  ;;  %v5995_v19 = vadd.f32 %v2644_v62, %v7456_v43  ;;  %v3021_v0 = vmax.f32 %v3007_v18, 0.0  ;;  %v6481_v43 = vld [vmem:[%s8106_s3 + $0x110] ss:$8 sps:$4 sm:$0xff]   ;;  %v6496_v33 = vld [vmem:[%s8106_s3 + $0x160] ss:$8 sps:$4 sm:$0xff]  }
 0x2ec   : > { %v6502_v18 = vld [vmem:[%s8106_s3 + $0x180] ss:$8 sps:$4 sm:$0xff]   ;;  %v6505_v62 = vld [vmem:[%s8106_s3 + $0x190] ss:$8 sps:$4 sm:$0xff]  }
 0x2ed   : > { %v2914_v39 = vmax.f32 %v5994_v37, %v5995_v19  ;;  %v7601_v41 = vpack.c.bf16 %v3021_v0, %v3020_v51  ;;  %v6507_v37 = vld [vmem:[%s8106_s3 + $0x194] ss:$8 sps:$4 sm:$0xff]   ;;  %v6508_v19 = vld [vmem:[%s8106_s3 + $0x1a0] ss:$8 sps:$4 sm:$0xff]  }
 0x2ef   : > { %v2987_v29 = vmax.f32 %v2913_v12, %v2914_v39  ;;  %v2648_v4 = vpop.f32.mrb[48].mxu0  ;;  %3399 = vmatmul.mubr.bf16.vlgmr.msra.gmra.mrb[40].mxu1 %v7498_v54  ;;  %v6510_v12 = vld [vmem:[%s8106_s3 + $0x1a4] ss:$8 sps:$4 sm:$0xff]   ;;  %v6514_v39 = vld [vmem:[%s8106_s3 + $0x1c0] ss:$8 sps:$4 sm:$0xff]  }
 0x2f0   : > { %v5996_v42 = vadd.f32 %v2648_v4, %v7458_v23  ;;  %v2650_v5 = vpop.f32.mrb[49].mxu0  ;;  %3623 = vmatpush1.bf16.msra.mxu1 %v6478_v3  ;;  %3408 = vmatprep.mubr.bf16.mxu1 %v6670_v34  ;;  %v6516_v3 = vld [vmem:[%s8106_s3 + $0x1c4] ss:$8 sps:$4 sm:$0xff]  }
 0x2f1   : > { %v5997_v6 = vadd.f32 %v2650_v5, %v7460_v44  ;;  %v2652_v22 = vpop.f32.mrb[50].mxu0  ;;  %3624 = vmatprep.subr.bf16.mxu1 %v6483_v59  ;;  %v3008_v54 = vadd.f32 %v7477_v10, %v2987_v29  ;;  %v6484_v44 = vld [vmem:[%s8106_s3 + $0x120] ss:$8 sps:$4 sm:$0xff]   ;;  %v6519_v59 = vld [vmem:[%s8106_s3 + $0x1d4] ss:$8 sps:$4 sm:$0xff]  }
 0x2f2   : > { %v5998_v23 = vadd.f32 %v2652_v22, %v7462_v45  ;;  %v2654_v46 = vpop.f32.mrb[51].mxu0  ;;  %v6517_v29 = vld [vmem:[%s8106_s3 + $0x1d0] ss:$8 sps:$4 sm:$0xff]   ;;  %v6522_v4 = vld [vmem:[%s8106_s3 + $0x1e4] ss:$8 sps:$4 sm:$0xff]  }
 0x2f3   : > { %v2915_v25 = vmax.f32 %v5996_v42, %v5997_v6  ;;  %v5999_v50 = vadd.f32 %v2654_v46, %v7464_v48  ;;  %v3022_v26 = vmax.f32 %v3008_v54, 0.0  ;;  %v6520_v42 = vld [vmem:[%s8106_s3 + $0x1e0] ss:$8 sps:$4 sm:$0xff]   ;;  %v6525_v5 = vld [vmem:[%s8106_s3 + $0x1f4] ss:$8 sps:$4 sm:$0xff]  }
 0x2f4   : > { %3625 = vmatpush1.bf16.msra.mxu1 %v6481_v43  ;;  %v6523_v43 = vld [vmem:[%s8106_s3 + $0x1f0] ss:$8 sps:$4 sm:$0xff]   ;;  %v6528_v6 = vld [vmem:[%s8106_s3 + $0x204] ss:$8 sps:$4 sm:$0xff]   ;;  %v6526_v22 = vld [vmem:[%s8106_s3 + $0x200] ss:$8 sps:$4 sm:$0xff]  }
 0x2f5   : > { %v2916_v7 = vmax.f32 %v5998_v23, %v5999_v50  ;;  %3626 = vmatprep.subr.bf16.mxu1 %v6486_v24  ;;  %v7622_v63 = vpack.c.bf16 %v3022_v26, %v3021_v0  ;;  %v6511_v0 = vld [vmem:[%s8106_s3 + $0x1b0] ss:$8 sps:$4 sm:$0xff]   ;;  %v6531_v24 = vld [vmem:[%s8106_s3 + $0x214] ss:$8 sps:$4 sm:$0xff]   ;;  %v6534_v23 = vld [vmem:[%s8106_s3 + $0x224] ss:$8 sps:$4 sm:$0xff]  }
 0x2f6   : > { %v6529_v54 = vld [vmem:[%s8106_s3 + $0x210] ss:$8 sps:$4 sm:$0xff]   ;;  %v6532_v46 = vld [vmem:[%s8106_s3 + $0x220] ss:$8 sps:$4 sm:$0xff]   ;;  %v6540_v50 = vld [vmem:[%s8106_s3 + $0x244] ss:$8 sps:$4 sm:$0xff]  }
 0x2f7   : > { %v2988_v13 = vmax.f32 %v2915_v25, %v2916_v7  ;;  %v2658_v45 = vpop.f32.mrb[52].mxu0  ;;  %3409 = vmatmul.mubr.bf16.gmra.mrb[44].mxu1 %v7541_v60  ;;  %v6535_v25 = vld [vmem:[%s8106_s3 + $0x230] ss:$8 sps:$4 sm:$0xff]   ;;  %v6546_v7 = vld [vmem:[%s8106_s3 + $0x264] ss:$8 sps:$4 sm:$0xff]  }
 0x2f8   : > { %v6000_v48 = vadd.f32 %v2658_v45, %v7466_v31  ;;  %v2660_v14 = vpop.f32.mrb[53].mxu0  ;;  %3627 = vmatpush1.bf16.msra.mxu1 %v6484_v44  ;;  %3418 = vmatprep.mubr.bf16.mxu1 %v6670_v34  ;;  %v6541_v44 = vld [vmem:[%s8106_s3 + $0x250] ss:$8 sps:$4 sm:$0xff]   ;;  %v6671_v45 = vmov 0.0  }
 0x2f9   : > { %v6001_v27 = vadd.f32 %v2660_v14, %v7468_v49  ;;  %v2662_v20 = vpop.f32.mrb[54].mxu0  ;;  %3628 = vmatprep.subr.bf16.mxu1 %v6489_v21  ;;  %v3009_v28 = vadd.f32 %v7477_v10, %v2988_v13  ;;  %v6490_v49 = vld [vmem:[%s8106_s3 + $0x140] ss:$8 sps:$4 sm:$0xff]   ;;  %v6547_v13 = vld [vmem:[%s8106_s3 + $0x270] ss:$8 sps:$4 sm:$0xff]  }
 0x2fa   : > { %v6002_v31 = vadd.f32 %v2662_v20, %v7470_v52  ;;  %v2664_v16 = vpop.f32.mrb[55].mxu0  ;;  %v6493_v52 = vld [vmem:[%s8106_s3 + $0x150] ss:$8 sps:$4 sm:$0xff]   ;;  %v6544_v21 = vld [vmem:[%s8106_s3 + $0x260] ss:$8 sps:$4 sm:$0xff]  }
 0x2fb   : > { %v2917_v56 = vmax.f32 %v6000_v48, %v6001_v27  ;;  %v6003_v30 = vadd.f32 %v2664_v16, %v7472_v53  ;;  %v3023_v1 = vmax.f32 %v3009_v28, 0.0  ;;  %v6498_v53 = vld [vmem:[%s8106_s3 + $0x164] ss:$8 sps:$4 sm:$0xff]   ;;  %v6552_v14 = vld [vmem:[%s8108_s5 + $0x50] sm:$0xff]  }
 0x2fc   : > { %3629 = vmatpush1.bf16.msra.mxu1 %v6487_v15  ;;  %v6551_v48 = vld [vmem:[%s8108_s5 + $0x48] sm:$0xff]  }
 0x2fd   : > { %v2918_v47 = vmax.f32 %v6002_v31, %v6003_v30  ;;  %3630 = vmatprep.subr.bf16.mxu1 %v6492_v40  ;;  %v7643_v51 = vpack.c.bf16 %v3023_v1, %v3022_v26  ;;  %v6538_v26 = vld [vmem:[%s8106_s3 + $0x240] ss:$8 sps:$4 sm:$0xff]  }
 0x2fe   : > { %v6555_v15 = vld [vmem:[%s8108_s5 + $0x68] sm:$0xff]  }
 0x2ff   : > { %v2989_v57 = vmax.f32 %v2917_v56, %v2918_v47  ;;  %3419 = vmatmul.mubr.bf16.gmra.mrb[48].mxu1 %v7563_v8 }
 0x300   : > { %3631 = vmatpush1.bf16.msra.mxu1 %v6490_v49  ;;  %3428 = vmatprep.mubr.bf16.mxu1 %v6670_v34 }
 0x301   : > { %3632 = vmatprep.subr.bf16.mxu1 %v6495_v32  ;;  %v3010_v17 = vadd.f32 %v7477_v10, %v2989_v57  ;;  %v6499_v10 = vld [vmem:[%s8106_s3 + $0x170] ss:$8 sps:$4 sm:$0xff]   ;;  %v5617_v57 = vld [vmem:[%s8107_s4] ss:$0 sm:$0xff] }
 0x303   : > { %v3024_v11 = vmax.f32 %v3010_v17, 0.0 }
 0x304   : > { %3633 = vmatpush1.bf16.msra.mxu1 %v6493_v52 }
 0x305   : > { %3634 = vmatprep.subr.bf16.mxu1 %v6498_v53  ;;  %v7660_v61 = vpack.c.bf16 %v3024_v11, %v3023_v1 }
 0x307   : > { %3429 = vmatmul.mubr.bf16.gmra.mrb[52].mxu1 %v7579_v2 }
 0x308   : > { %3438 = vmatprep.mubr.bf16.mxu1 %v6670_v34  ;;  %3635 = vmatpush1.bf16.msra.mxu1 %v6496_v33 }
 0x309   : > { %3636 = vmatprep.subr.bf16.mxu1 %v6501_v35 }
 0x30c   : > { %3637 = vmatpush1.bf16.msra.mxu1 %v6499_v10  ;;  %v6558_v10 = vld [vmem:[%s8108_s5] sm:$0xff]  }
 0x30d   : > { %3878 = vmatprep.subr.bf16.mxu1 %v6504_v36 }
 0x30f   : > { %3439 = vmatmul.mubr.bf16.gmra.mrb[56].mxu1 %v7601_v41 }
 0x310   : > { %3654 = vmatprep.mubr.bf16.mxu1 %v6670_v34 }
 0x317   : > { %3655 = vmatmul.mubr.bf16.vlgmr.msra.gmra.mrb[40].mxu1 %v7517_v38  ;;  %v6513_v38 = vld [vmem:[%s8106_s3 + $0x1b4] ss:$8 sps:$4 sm:$0xff]  }
 0x318   : > { %3879 = vmatpush1.bf16.msra.mxu1 %v6502_v18  ;;  %3664 = vmatprep.mubr.bf16.mxu1 %v6670_v34 }
 0x319   : > { %3880 = vmatprep.subr.bf16.mxu1 %v6507_v37 }
 0x31c   : > { %3881 = vmatpush1.bf16.msra.mxu1 %v6505_v62  ;;  %v6559_v62 = vld [vmem:[%s8108_s5 + $0x8] sm:$0xff]  }
 0x31d   : > { %3882 = vmatprep.subr.bf16.mxu1 %v6510_v12 }
 0x31f   : > { %3665 = vmatmul.mubr.bf16.gmra.mrb[44].mxu1 %v7554_v58 }
 0x320   : > { %3883 = vmatpush1.bf16.msra.mxu1 %v6508_v19  ;;  %3674 = vmatprep.mubr.bf16.mxu1 %v6670_v34 }
 0x321   : > { %3884 = vmatprep.subr.bf16.mxu1 %v6513_v38 }
 0x324   : > { %3885 = vmatpush1.bf16.msra.mxu1 %v6511_v0 }
 0x325   : > { %3886 = vmatprep.subr.bf16.mxu1 %v6516_v3 }
 0x327   : > { %3675 = vmatmul.mubr.bf16.gmra.mrb[48].mxu1 %v7570_v55 }
 0x328   : > { %3887 = vmatpush1.bf16.msra.mxu1 %v6514_v39  ;;  %3684 = vmatprep.mubr.bf16.mxu1 %v6670_v34 }
 0x329   : > { %3888 = vmatprep.subr.bf16.mxu1 %v6519_v59  ;;  %v6560_v59 = vld [vmem:[%s8108_s5 + $0x10] sm:$0xff]  }
 0x32c   : > { %3889 = vmatpush1.bf16.msra.mxu1 %v6517_v29 }
 0x32d   : > { %3890 = vmatprep.subr.bf16.mxu1 %v6522_v4 }
 0x32f   : > { %3685 = vmatmul.mubr.bf16.gmra.mrb[52].mxu1 %v7586_v9 }
 0x330   : > { %3694 = vmatprep.mubr.bf16.mxu1 %v6670_v34  ;;  %3891 = vmatpush1.bf16.msra.mxu1 %v6520_v42  ;;  %v6561_v42 = vld [vmem:[%s8108_s5 + $0x18] sm:$0xff]  }
 0x331   : > { %3892 = vmatprep.subr.bf16.mxu1 %v6525_v5 }
 0x334   : > { %3893 = vmatpush1.bf16.msra.mxu1 %v6523_v43 }
 0x335   : > { %4134 = vmatprep.subr.bf16.mxu1 %v6528_v6 }
 0x337   : > { %3695 = vmatmul.mubr.bf16.gmra.mrb[56].mxu1 %v7622_v63 }
 0x338   : > { %3910 = vmatprep.mubr.bf16.mxu1 %v6670_v34 }
 0x33f   : > { %3911 = vmatmul.mubr.bf16.vlgmr.msra.gmra.mrb[40].mxu1 %v7541_v60  ;;  %v6537_v60 = vld [vmem:[%s8106_s3 + $0x234] ss:$8 sps:$4 sm:$0xff]  }
 0x340   : > { %4135 = vmatpush1.bf16.msra.mxu1 %v6526_v22  ;;  %3920 = vmatprep.mubr.bf16.mxu1 %v6670_v34 }
 0x341   : > { %4136 = vmatprep.subr.bf16.mxu1 %v6531_v24 }
 0x344   : > { %4137 = vmatpush1.bf16.msra.mxu1 %v6529_v54 }
 0x345   : > { %4138 = vmatprep.subr.bf16.mxu1 %v6534_v23  ;;  %v6562_v23 = vld [vmem:[%s8108_s5 + $0x20] sm:$0xff]  }
 0x347   : > { %3921 = vmatmul.mubr.bf16.gmra.mrb[44].mxu1 %v7563_v8  ;;  %v6543_v8 = vld [vmem:[%s8106_s3 + $0x254] ss:$8 sps:$4 sm:$0xff]  }
 0x348   : > { %4139 = vmatpush1.bf16.msra.mxu1 %v6532_v46  ;;  %3930 = vmatprep.mubr.bf16.mxu1 %v6670_v34 }
 0x349   : > { %4140 = vmatprep.subr.bf16.mxu1 %v6537_v60 }
 0x34c   : > { %4141 = vmatpush1.bf16.msra.mxu1 %v6535_v25  ;;  %v6563_v25 = vld [vmem:[%s8108_s5 + $0x28] sm:$0xff]  }
 0x34d   : > { %4142 = vmatprep.subr.bf16.mxu1 %v6540_v50 }
 0x34f   : > { %3931 = vmatmul.mubr.bf16.gmra.mrb[48].mxu1 %v7579_v2  ;;  %v6549_v2 = vld [vmem:[%s8106_s3 + $0x274] ss:$8 sps:$4 sm:$0xff]  }
 0x350   : > { %4143 = vmatpush1.bf16.msra.mxu1 %v6538_v26  ;;  %3940 = vmatprep.mubr.bf16.mxu1 %v6670_v34  ;;  %v6564_v26 = vld [vmem:[%s8108_s5 + $0x30] sm:$0xff]  }
 0x351   : > { %4144 = vmatprep.subr.bf16.mxu1 %v6543_v8 }
 0x354   : > { %4145 = vmatpush1.bf16.msra.mxu1 %v6541_v44  ;;  %v6565_v44 = vld [vmem:[%s8108_s5 + $0x38] sm:$0xff]  }
 0x355   : > { %4146 = vmatprep.subr.bf16.mxu1 %v6546_v7 }
 0x357   : > { %3941 = vmatmul.mubr.bf16.gmra.mrb[52].mxu1 %v7601_v41  ;;  %v6550_v41 = vld [vmem:[%s8108_s5 + $0x40] sm:$0xff]  }
 0x358   : > { %3950 = vmatprep.mubr.bf16.mxu1 %v6670_v34  ;;  %4147 = vmatpush1.bf16.msra.mxu1 %v6544_v21  ;;  %v6566_v21 = vld [vmem:[%s8108_s5 + $0x80] sm:$0xff]  }
 0x359   : > { %4148 = vmatprep.subr.bf16.mxu1 %v6549_v2 }
 0x35c   : > { %4149 = vmatpush1.bf16.msra.mxu1 %v6547_v13  ;;  %v6567_v13 = vld [vmem:[%s8108_s5 + $0x88] sm:$0xff]  }
 0x35d   : > { %5808 = vmatprep.subr.bf16.mxu1 %v6671_v45 }
 0x35f   : > { %3951 = vmatmul.mubr.bf16.gmra.mrb[56].mxu1 %v7643_v51 }
 0x360   : > { %4166 = vmatprep.mubr.bf16.mxu1 %v6670_v34 }
 0x367   : > { %4167 = vmatmul.mubr.bf16.vlgmr.msra.gmra.mrb[40].mxu1 %v7554_v58  ;;  %v6553_v58 = vld [vmem:[%s8108_s5 + $0x58] sm:$0xff]  }
 0x368   : > { %4176 = vmatprep.mubr.bf16.mxu1 %v6670_v34  ;;  %5809 = vmatpush3.bf16.msra.mxu1 %v6550_v41  ;;  %v6568_v41 = vld [vmem:[%s8108_s5 + $0x90] sm:$0xff]  }
 0x369   : > { %5810 = vmatprep.subr.bf16.mxu1 %v6671_v45 }
 0x36c   : > { %5811 = vmatpush3.bf16.msra.mxu1 %v6551_v48  ;;  %v6569_v48 = vld [vmem:[%s8108_s5 + $0x98] sm:$0xff]  }
 0x36d   : > { %5812 = vmatprep.subr.bf16.mxu1 %v6671_v45 }
 0x36f   : > { %4177 = vmatmul.mubr.bf16.gmra.mrb[44].mxu1 %v7570_v55  ;;  %v6554_v55 = vld [vmem:[%s8108_s5 + $0x60] sm:$0xff]  }
 0x370   : > { %4186 = vmatprep.mubr.bf16.mxu1 %v6670_v34  ;;  %5813 = vmatpush3.bf16.msra.mxu1 %v6552_v14  ;;  %v6570_v14 = vld [vmem:[%s8108_s5 + $0xa0] sm:$0xff]  }
 0x371   : > { %5814 = vmatprep.subr.bf16.mxu1 %v6671_v45 }
 0x374   : > { %5815 = vmatpush3.bf16.msra.mxu1 %v6553_v58  ;;  %v6571_v58 = vld [vmem:[%s8108_s5 + $0xa8] sm:$0xff]  }
 0x375   : > { %5816 = vmatprep.subr.bf16.mxu1 %v6671_v45 }
 0x377   : > { %4187 = vmatmul.mubr.bf16.gmra.mrb[48].mxu1 %v7586_v9  ;;  %v6557_v9 = vld [vmem:[%s8108_s5 + $0x78] sm:$0xff]  }
 0x378   : > { %4196 = vmatprep.mubr.bf16.mxu1 %v6670_v34  ;;  %5817 = vmatpush3.bf16.msra.mxu1 %v6554_v55  ;;  %v6572_v55 = vld [vmem:[%s8108_s5 + $0xb0] sm:$0xff]  }
 0x379   : > { %5818 = vmatprep.subr.bf16.mxu1 %v6671_v45 }
 0x37c   : > { %5819 = vmatpush3.bf16.msra.mxu1 %v6555_v15  ;;  %v6573_v15 = vld [vmem:[%s8108_s5 + $0xb8] sm:$0xff]  }
 0x37d   : > { %5820 = vmatprep.subr.bf16.mxu1 %v6671_v45 }
 0x37f   : > { %4197 = vmatmul.mubr.bf16.gmra.mrb[52].mxu1 %v7622_v63 }
 0x380   : > { %4206 = vmatprep.mubr.bf16.mxu1 %v6670_v34  ;;  %v6556_v34 = vld [vmem:[%s8108_s5 + $0x70] sm:$0xff]  }
 0x381   : > { %5821 = vmatpush3.bf16.msra.mxu1 %v6556_v34 }
 0x382   : > { %5822 = vmatprep.subr.bf16.mxu1 %v6671_v45 }
 0x385   : > { %5823 = vmatpush3.bf16.msra.mxu1 %v6557_v9  ;;  %v6574_v9 = vld [vmem:[%s8108_s5 + $0xc0] sm:$0xff]  }
 0x386   : > { %5828 = vmatprep.subr.bf16.mxu1 %v6671_v45 }
 0x387   : > { %4207 = vmatmul.mubr.bf16.gmra.mrb[56].mxu1 %v7660_v61 }
 0x388   : > { %5824 = vmatprep.mubr.msk.bf16.mxu1 %vm6672_vm0, %v6671_v45 }
 0x43a   : > { %v4168_v63 = vpop.f32.mrb[40].mxu1 }
 0x43b   : > { %v4170_v27 = vpop.f32.mrb[41].mxu1 }
 0x43c   : > { %v4297_v20 = vmax.f32 %v4168_v63, %v4170_v27  ;;  %v4172_v40 = vpop.f32.mrb[42].mxu1  ;;  %v6575_v27 = vld [vmem:[%s8108_s5 + $0xc8] sm:$0xff]  }
 0x43d   : > { %v4174_v28 = vpop.f32.mrb[43].mxu1 }
 0x43e   : > { %v4298_v31 = vmax.f32 %v4172_v40, %v4174_v28  ;;  %v6577_v40 = vld [vmem:[%s8108_s5 + $0xd8] sm:$0xff]   ;;  %v6578_v28 = vld [vmem:[%s8108_s5 + $0xe0] sm:$0xff]  }
 0x440   : > { %v4328_v16 = vmax.f32 %v4297_v20, %v4298_v31  ;;  %v6576_v20 = vld [vmem:[%s8108_s5 + $0xd0] sm:$0xff]   ;;  %v6579_v31 = vld [vmem:[%s8108_s5 + $0xe8] sm:$0xff]  }
 0x442   : > { %v4178_v56 = vpop.f32.mrb[44].mxu1  ;;  %v4340_v8 = vadd.f32 %v5617_v57, %v4328_v16  ;;  %v6580_v16 = vld [vmem:[%s8108_s5 + $0xf0] sm:$0xff]  }
 0x443   : > { %v4180_v30 = vpop.f32.mrb[45].mxu1 }
 0x444   : > { %v4299_v1 = vmax.f32 %v4178_v56, %v4180_v30  ;;  %v4182_v49 = vpop.f32.mrb[46].mxu1  ;;  %v4345_v7 = vmax.f32 %v4340_v8, 0.0  ;;  %v6581_v56 = vld [vmem:[%s8108_s5 + $0xf8] sm:$0xff]  }
 0x445   : > { %v4184_v47 = vpop.f32.mrb[47].mxu1 }
 0x446   : > { %v4300_v32 = vmax.f32 %v4182_v49, %v4184_v47  ;;  %v4356_v2 = vpack.c.bf16 %v4345_v7, %v4345_v7  ;;  %v6583_v47 = vld [vmem:[%s8108_s5 + $0x108] sm:$0xff]  }
 0x448   : > { %v4329_v51 = vmax.f32 %v4299_v1, %v4300_v32  ;;  %v6582_v1 = vld [vmem:[%s8108_s5 + $0x100] sm:$0xff]   ;;  %v6584_v32 = vld [vmem:[%s8108_s5 + $0x110] sm:$0xff]  }
 0x44a   : > { %v4341_v52 = vadd.f32 %v5617_v57, %v4329_v51  ;;  %v4188_v53 = vpop.f32.mrb[48].mxu1  ;;  %v6585_v51 = vld [vmem:[%s8108_s5 + $0x118] sm:$0xff]  }
 0x44b   : > { %v4190_v17 = vpop.f32.mrb[49].mxu1 }
 0x44c   : > { %v4346_v11 = vmax.f32 %v4341_v52, 0.0  ;;  %v4301_v33 = vmax.f32 %v4188_v53, %v4190_v17  ;;  %v4192_v35 = vpop.f32.mrb[50].mxu1  ;;  %v6587_v52 = vld [vmem:[%s8108_s5 + $0x128] sm:$0xff]   ;;  %v6588_v53 = vld [vmem:[%s8108_s5 + $0x130] sm:$0xff]   ;;  %v6589_v17 = vld [vmem:[%s8108_s5 + $0x138] sm:$0xff]  }
 0x44d   : > { %v4194_v61 = vpop.f32.mrb[51].mxu1 }
 0x44e   : > { %v4375_v36 = vpack.c.bf16 %v4346_v11, %v4346_v11  ;;  %v4302_v18 = vmax.f32 %v4192_v35, %v4194_v61  ;;  %v6590_v35 = vld [vmem:[%s8110_s7] sm:$0xff]   ;;  %v6591_v61 = vld [vmem:[%s8110_s7 + $0x8] sm:$0xff]  }
 0x450   : > { %v4330_v37 = vmax.f32 %v4301_v33, %v4302_v18  ;;  %5825 = vmatmul.mubr.bf16.vlgmr.msra.gmra.mrb[60].mxu1 %v4375_v36  ;;  %v6593_v36 = vld [vmem:[%s8110_s7 + $0x18] sm:$0xff]   ;;  %v6594_v18 = vld [vmem:[%s8110_s7 + $0x20] sm:$0xff]  }
 0x451   : > { %5829 = vmatpush3.bf16.msra.mxu1 %v6558_v10  ;;  %5844 = vmatprep.mubr.msk.bf16.mxu1 %vm6672_vm0, %v6671_v45  ;;  %v6592_v10 = vld [vmem:[%s8110_s7 + $0x10] sm:$0xff]  }
 0x452   : > { %v7840_v12 = vadd.f32 %v5617_v57, %v4330_v37  ;;  %v4198_v19 = vpop.f32.mrb[52].mxu1  ;;  %5830 = vmatprep.subr.bf16.mxu1 %v6671_v45  ;;  %v6595_v37 = vld [vmem:[%s8110_s7 + $0x28] sm:$0xff]  }
 0x453   : > { %v4200_v38 = vpop.f32.mrb[53].mxu1 }
 0x454   : > { %v4303_v0 = vmax.f32 %v4198_v19, %v4200_v38  ;;  %v4202_v3 = vpop.f32.mrb[54].mxu1  ;;  %v4347_v34 = vmax.f32 %v7840_v12, 0.0 }
 0x455   : > { %5831 = vmatpush3.bf16.msra.mxu1 %v6559_v62  ;;  %v4204_v39 = vpop.f32.mrb[55].mxu1  ;;  %v6596_v62 = vld [vmem:[%s8110_s7 + $0x30] sm:$0xff]  }
 0x456   : > { %v4304_v29 = vmax.f32 %v4202_v3, %v4204_v39  ;;  %5832 = vmatprep.subr.bf16.mxu1 %v6671_v45  ;;  %v4571_v63 = vpack.c.bf16 %v4347_v34, %v4347_v34  ;;  %v6604_v34 = vld [vmem:[%s8112_s9 + $0x30] sm:$0xff]  }
 0x458   : > { %v4331_v4 = vmax.f32 %v4303_v0, %v4304_v29  ;;  %v6597_v0 = vld [vmem:[%s8110_s7 + $0x38] sm:$0xff]  }
 0x459   : > { %5833 = vmatpush3.bf16.msra.mxu1 %v6560_v59 }
 0x45a   : > { %v7850_v5 = vadd.f32 %v5617_v57, %v4331_v4  ;;  %v4208_v43 = vpop.f32.mrb[56].mxu1  ;;  %5834 = vmatprep.subr.bf16.mxu1 %v6671_v45 }
 0x45b   : > { %v4210_v6 = vpop.f32.mrb[57].mxu1 }
 0x45c   : > { %v4305_v22 = vmax.f32 %v4208_v43, %v4210_v6  ;;  %v4212_v24 = vpop.f32.mrb[58].mxu1  ;;  %v4348_v30 = vmax.f32 %v7850_v5, 0.0 }
 0x45d   : > { %5835 = vmatpush3.bf16.msra.mxu1 %v6561_v42  ;;  %v4214_v54 = vpop.f32.mrb[59].mxu1 }
 0x45e   : > { %v4306_v46 = vmax.f32 %v4212_v24, %v4214_v54  ;;  %5836 = vmatprep.subr.bf16.mxu1 %v6671_v45  ;;  %v4680_v49 = vpack.c.bf16 %v4348_v30, %v4348_v30 }
 0x460   : > { %v4332_v60 = vmax.f32 %v4305_v22, %v4306_v46 }
 0x461   : > { %5837 = vmatpush3.bf16.msra.mxu1 %v6562_v23 }
 0x462   : > { %v7860_v50 = vadd.f32 %v5617_v57, %v4332_v60  ;;  %5838 = vmatprep.subr.bf16.mxu1 %v6671_v45  ;;  %v6586_v57 = vld [vmem:[%s8108_s5 + $0x120] sm:$0xff]  }
 0x464   : > { %v4349_v11 = vmax.f32 %v7860_v50, 0.0 }
 0x465   : > { %5839 = vmatpush3.bf16.msra.mxu1 %v6563_v25 }
 0x466   : > { %5840 = vmatprep.subr.bf16.mxu1 %v6671_v45  ;;  %v4789_v33 = vpack.c.bf16 %v4349_v11, %v4349_v11 }
 0x469   : > { %5841 = vmatpush3.bf16.msra.mxu1 %v6564_v26  ;;  %v5722_v26 = vld [vmem:[%s8109_s6] ss:$0 sm:$0xff] }
 0x46a   : > { %5842 = vmatprep.subr.bf16.mxu1 %v6671_v45 }
 0x46d   : > { %5843 = vmatpush3.bf16.msra.mxu1 %v6565_v44 }
 0x46e   : > { %5848 = vmatprep.subr.bf16.mxu1 %v6671_v45 }
 0x470   : > { %5845 = vmatmul.mubr.bf16.vlgmr.msra.gmra.mrb[64].mxu1 %v4356_v2 }
 0x471   : > { %5849 = vmatpush3.bf16.msra.mxu1 %v6566_v21  ;;  %5864 = vmatprep.mubr.msk.bf16.mxu1 %vm6672_vm0, %v6671_v45 }
 0x472   : > { %5850 = vmatprep.subr.bf16.mxu1 %v6671_v45 }
 0x475   : > { %5851 = vmatpush3.bf16.msra.mxu1 %v6567_v13  ;;  %v6598_v13 = vld [vmem:[%s8112_s9] sm:$0xff]  }
 0x476   : > { %5852 = vmatprep.subr.bf16.mxu1 %v6671_v45 }
 0x479   : > { %5853 = vmatpush3.bf16.msra.mxu1 %v6568_v41 }
 0x47a   : > { %5854 = vmatprep.subr.bf16.mxu1 %v6671_v45 }
 0x47d   : > { %5855 = vmatpush3.bf16.msra.mxu1 %v6569_v48  ;;  %v6599_v48 = vld [vmem:[%s8112_s9 + $0x8] sm:$0xff]  }
 0x47e   : > { %5856 = vmatprep.subr.bf16.mxu1 %v6671_v45 }
 0x481   : > { %5857 = vmatpush3.bf16.msra.mxu1 %v6570_v14  ;;  %v6600_v14 = vld [vmem:[%s8112_s9 + $0x10] sm:$0xff]  }
 0x482   : > { %5858 = vmatprep.subr.bf16.mxu1 %v6671_v45 }
 0x485   : > { %5859 = vmatpush3.bf16.msra.mxu1 %v6571_v58  ;;  %v6601_v58 = vld [vmem:[%s8112_s9 + $0x18] sm:$0xff]  }
 0x486   : > { %5860 = vmatprep.subr.bf16.mxu1 %v6671_v45 }
 0x489   : > { %5861 = vmatpush3.bf16.msra.mxu1 %v6572_v55  ;;  %v6602_v55 = vld [vmem:[%s8112_s9 + $0x20] sm:$0xff]  }
 0x48a   : > { %5862 = vmatprep.subr.bf16.mxu1 %v6671_v45 }
 0x48d   : > { %5863 = vmatpush3.bf16.msra.mxu1 %v6573_v15  ;;  %v6603_v15 = vld [vmem:[%s8112_s9 + $0x28] sm:$0xff]  }
 0x48e   : > { %5868 = vmatprep.subr.bf16.mxu1 %v6671_v45 }
 0x490   : > { %5865 = vmatmul.mubr.bf16.vlgmr.msra.gmra.mrb[68].mxu1 %v4571_v63  ;;  %v5723_v63 = vld [vmem:[%s8111_s8] ss:$0 sm:$0xff] }
 0x491   : > { %5869 = vmatpush3.bf16.msra.mxu1 %v6574_v9  ;;  %5884 = vmatprep.mubr.msk.bf16.mxu1 %vm6672_vm0, %v6671_v45  ;;  %v6605_v9 = vld [vmem:[%s8112_s9 + $0x38] sm:$0xff]  }
 0x492   : > { %5870 = vmatprep.subr.bf16.mxu1 %v6671_v45 }
 0x495   : > { %5871 = vmatpush3.bf16.msra.mxu1 %v6575_v27 }
 0x496   : > { %5872 = vmatprep.subr.bf16.mxu1 %v6671_v45 }
 0x499   : > { %5873 = vmatpush3.bf16.msra.mxu1 %v6576_v20 }
 0x49a   : > { %5874 = vmatprep.subr.bf16.mxu1 %v6671_v45 }
 0x49d   : > { %5875 = vmatpush3.bf16.msra.mxu1 %v6577_v40 }
 0x49e   : > { %5876 = vmatprep.subr.bf16.mxu1 %v6671_v45 }
 0x4a1   : > { %5877 = vmatpush3.bf16.msra.mxu1 %v6578_v28 }
 0x4a2   : > { %5878 = vmatprep.subr.bf16.mxu1 %v6671_v45 }
 0x4a5   : > { %5879 = vmatpush3.bf16.msra.mxu1 %v6579_v31 }
 0x4a6   : > { %5880 = vmatprep.subr.bf16.mxu1 %v6671_v45 }
 0x4a9   : > { %5881 = vmatpush3.bf16.msra.mxu1 %v6580_v16 }
 0x4aa   : > { %5882 = vmatprep.subr.bf16.mxu1 %v6671_v45 }
 0x4ad   : > { %5883 = vmatpush3.bf16.msra.mxu1 %v6581_v56 }
 0x4ae   : > { %5888 = vmatprep.subr.bf16.mxu1 %v6671_v45 }
 0x4b0   : > { %5885 = vmatmul.mubr.bf16.vlgmr.msra.gmra.mrb[72].mxu1 %v4680_v49 }
 0x4b1   : > { %5889 = vmatpush3.bf16.msra.mxu1 %v6582_v1  ;;  %5904 = vmatprep.mubr.msk.bf16.mxu1 %vm6672_vm0, %v6671_v45 }
 0x4b2   : > { %5890 = vmatprep.subr.bf16.mxu1 %v6671_v45 }
 0x4b5   : > { %5891 = vmatpush3.bf16.msra.mxu1 %v6583_v47 }
 0x4b6   : > { %5892 = vmatprep.subr.bf16.mxu1 %v6671_v45 }
 0x4b9   : > { %5893 = vmatpush3.bf16.msra.mxu1 %v6584_v32 }
 0x4ba   : > { %5894 = vmatprep.subr.bf16.mxu1 %v6671_v45 }
 0x4bd   : > { %5895 = vmatpush3.bf16.msra.mxu1 %v6585_v51 }
 0x4be   : > { %5896 = vmatprep.subr.bf16.mxu1 %v6671_v45 }
 0x4c1   : > { %5897 = vmatpush3.bf16.msra.mxu1 %v6586_v57 }
 0x4c2   : > { %5898 = vmatprep.subr.bf16.mxu1 %v6671_v45 }
 0x4c5   : > { %5899 = vmatpush3.bf16.msra.mxu1 %v6587_v52 }
 0x4c6   : > { %5900 = vmatprep.subr.bf16.mxu1 %v6671_v45 }
 0x4c9   : > { %5901 = vmatpush3.bf16.msra.mxu1 %v6588_v53 }
 0x4ca   : > { %5902 = vmatprep.subr.bf16.mxu1 %v6671_v45 }
 0x4cd   : > { %5903 = vmatpush3.bf16.msra.mxu1 %v6589_v17 }
 0x4ce   : > { %5908 = vmatprep.subr.bf16.mxu1 %v6671_v45 }
 0x4d0   : > { %5905 = vmatmul.mubr.bf16.vlgmr.msra.gmra.mrb[76].mxu1 %v4789_v33 }
 0x4d1   : > { %5924 = vmatprep.mubr.msk.bf16.mxu1 %vm6672_vm0, %v6671_v45  ;;  %5909 = vmatpush3.bf16.msra.mxu1 %v6590_v35 }
 0x4d2   : > { %5910 = vmatprep.subr.bf16.mxu1 %v6671_v45 }
 0x4d5   : > { %5911 = vmatpush3.bf16.msra.mxu1 %v6591_v61 }
 0x4d6   : > { %5912 = vmatprep.subr.bf16.mxu1 %v6671_v45 }
 0x4d9   : > { %5913 = vmatpush3.bf16.msra.mxu1 %v6592_v10 }
 0x4da   : > { %5914 = vmatprep.subr.bf16.mxu1 %v6671_v45 }
 0x4dd   : > { %5915 = vmatpush3.bf16.msra.mxu1 %v6593_v36 }
 0x4de   : > { %5916 = vmatprep.subr.bf16.mxu1 %v6671_v45 }
 0x4e1   : > { %5917 = vmatpush3.bf16.msra.mxu1 %v6594_v18 }
 0x4e2   : > { %5918 = vmatprep.subr.bf16.mxu1 %v6671_v45 }
 0x4e5   : > { %5919 = vmatpush3.bf16.msra.mxu1 %v6595_v37 }
 0x4e6   : > { %5920 = vmatprep.subr.bf16.mxu1 %v6671_v45 }
 0x4e9   : > { %5921 = vmatpush3.bf16.msra.mxu1 %v6596_v62 }
 0x4ea   : > { %5922 = vmatprep.subr.bf16.mxu1 %v6671_v45 }
 0x4ed   : > { %5923 = vmatpush3.bf16.msra.mxu1 %v6597_v0 }
 0x4ee   : > { %5928 = vmatprep.subr.bf16.mxu1 %v6671_v45 }
 0x523   : > { %v4475_v12 = vpop.f32.mrb[60].mxu1 }
 0x524   : > { %v5826_v19 = vpop.f32.mrb[61].mxu1 }
 0x525   : > { %v4478_v38 = vpop.f32.mrb[62].mxu1 }
 0x526   : > { %v5827_v3 = vpop.f32.mrb[63].mxu1 }
 0x543   : > { %v4563_v39 = vpop.f32.mrb[64].mxu1 }
 0x544   : > { %v4564_v59 = vadd.f32 %v4563_v39, %v4475_v12  ;;  %v5846_v29 = vpop.f32.mrb[65].mxu1 }
 0x545   : > { %v4566_v4 = vpop.f32.mrb[66].mxu1 }
 0x546   : > { %v5847_v42 = vpop.f32.mrb[67].mxu1 }
 0x563   : > { %v4671_v5 = vpop.f32.mrb[68].mxu1 }
 0x564   : > { %v4677_v43 = vadd.f32 %v4671_v5, %v4564_v59  ;;  %v5866_v6 = vpop.f32.mrb[69].mxu1 }
 0x565   : > { %v4674_v22 = vpop.f32.mrb[70].mxu1 }
 0x566   : > { %v5867_v24 = vpop.f32.mrb[71].mxu1 }
 0x583   : > { %v4780_v54 = vpop.f32.mrb[72].mxu1 }
 0x584   : > { %v4786_v23 = vadd.f32 %v4780_v54, %v4677_v43  ;;  %v5886_v46 = vpop.f32.mrb[73].mxu1 }
 0x585   : > { %v4783_v60 = vpop.f32.mrb[74].mxu1 }
 0x586   : > { %v5887_v25 = vpop.f32.mrb[75].mxu1 }
 0x5a3   : > { %v4889_v50 = vpop.f32.mrb[76].mxu1 }
 0x5a4   : > { %v4895_v8 = vadd.f32 %v4889_v50, %v4786_v23  ;;  %v5906_v44 = vpop.f32.mrb[77].mxu1 }
 0x5a5   : > { %v4892_v7 = vpop.f32.mrb[78].mxu1 }
 0x5a6   : > { %v4903_v21 = vadd.f32 %v5722_v26, %v4895_v8  ;;  %v5907_v2 = vpop.f32.mrb[79].mxu1 }
 0x5a8   : > { %v4904_v41 = vpack.c.bf16 %v4903_v21, %v4903_v21 }
 0x5aa   : > { %5925 = vmatmul.mubr.bf16.vlgmr.msra.gmra.mrb[80].mxu1 %v4904_v41 }
 0x5ab   : > { %5929 = vmatpush3.bf16.msra.mxu1 %v6598_v13  ;;  %5944 = vmatprep.mubr.msk.bf16.mxu1 %vm6672_vm0, %v6671_v45 }
 0x5ac   : > { %5930 = vmatprep.subr.bf16.mxu1 %v6671_v45 }
 0x5af   : > { %5931 = vmatpush3.bf16.msra.mxu1 %v6599_v48 }
 0x5b0   : > { %5932 = vmatprep.subr.bf16.mxu1 %v6671_v45 }
 0x5b3   : > { %5933 = vmatpush3.bf16.msra.mxu1 %v6600_v14 }
 0x5b4   : > { %5934 = vmatprep.subr.bf16.mxu1 %v6671_v45 }
 0x5b7   : > { %5935 = vmatpush3.bf16.msra.mxu1 %v6601_v58 }
 0x5b8   : > { %5936 = vmatprep.subr.bf16.mxu1 %v6671_v45 }
 0x5bb   : > { %5937 = vmatpush3.bf16.msra.mxu1 %v6602_v55 }
 0x5bc   : > { %5938 = vmatprep.subr.bf16.mxu1 %v6671_v45 }
 0x5bf   : > { %5939 = vmatpush3.bf16.msra.mxu1 %v6603_v15 }
 0x5c0   : > { %5940 = vmatprep.subr.bf16.mxu1 %v6671_v45 }
 0x5c3   : > { %5941 = vmatpush3.bf16.msra.mxu1 %v6604_v34 }
 0x5c4   : > { %5942 = vmatprep.subr.bf16.mxu1 %v6671_v45  ;;  %v5732_v45 = vld [vmem:[%s8113_s10] ss:$0 sm:$0xff] }
 0x5c7   : > { %5943 = vmatpush3.bf16.msra.mxu1 %v6605_v9 }
 0x67d   : > { %v5010_v27 = vpop.f32.mrb[80].mxu1 }
 0x67e   : > { %v5011_v20 = vadd.f32 %v5723_v63, %v5010_v27  ;;  %v5926_v40 = vpop.f32.mrb[81].mxu1 }
 0x67f   : > { %v5013_v28 = vpop.f32.mrb[82].mxu1 }
 0x680   : > { %v5016_v31 = vpack.c.bf16 %v5011_v20, %v5011_v20  ;;  %v5927_v16 = vpop.f32.mrb[83].mxu1 }
 0x682   : > { %5945 = vmatmul.mubr.bf16.vlgmr.msra.gmra.mrb[84].mxu1 %v5016_v31 }
 0x755   : > { %v5122_v56 = vpop.f32.mrb[84].mxu1 }
 0x756   : > { %v5123_v30 = vadd.f32 %v5732_v45, %v5122_v56  ;;  %v5946_v1 = vpop.f32.mrb[85].mxu1 }
 0x757   : > { %v5125_v49 = vpop.f32.mrb[86].mxu1 }
 0x758   : > { %5128 = vst [vmem:[%s542_s29] sm:$0xff] %v5123_v30  ;;  %v5947_v47 = vpop.f32.mrb[87].mxu1 }
 0x759   : > { %6619 = shalt.err (!%p6616_p5)
}
 0x75a   : > { %s6620_s25 = scalar_lea.hbm %s8059_s14, 128  ;;  %s6624_s15 = scalar_lea.hbm %s8114_s11, 256 }
 0x75b   : > { %p6621_p7 = scmp.ne.s32.totalorder %s8059_s14, %s6620_s25  ;;  %p6625_p12 = scmp.lt.u32.totalorder %s8059_s14, %s8114_s11 }
 0x75c   : > { %p6626_p13 = scmp.lt.u32.totalorder %s6624_s15, %s6620_s25  ;;  %p6628_p1 = scmp.lt.u32.totalorder %s6620_s25, %s8059_s14 }
 0x75d   : > { %p6622_p10 = pnand %p6621_p7, %p6772_p6 }
 0x75e   : > { %p6627_p0 = por %p6626_p13, %p6625_p12 }
 0x75f   : > { %p6623_p11 = pneg %p6622_p10 }
 0x760   : > { %p6629_p2 = por %p6628_p1, %p6627_p0 }
 0x762   : > { %p6630_p3 = pnand %p6629_p2, %p6623_p11 }
 0x764   : > { %6633 = shalt.err (!%p6630_p3)
}
 0x765   : > { %6268 = dma.vmem_to_hbm [thread:$0]  (%p6772_p6), %s8061_s30, 128, %s8059_s14, %s5130_s16  }
 0x766 PF: > { %s5155_s12 = sand.u32 1, %s6656_s17   ;;  %p6271_p4 = pnand %p5210_p9, %p6776_p8 }
 0x767   : > { %s5156_s13 = scalar_lea.sflag [#allocation10], %s5155_s12 }
 0x768   : > { %6651 = dma.done.wait (!%p6271_p4), %s5156_s13, 128  }
 0x769   : > { %6653 = vsyncadd (!%p6271_p4), %s5156_s13, 4294967168  ;;  %p21_p5 = scmp.ge.s32.totalorder %s6757_s23, 4   ;;  %s8119_s17 = smov %s6660_s18 }
 0x76a   : > { %s8120_s18 = smov %s6664_s19  ;;  %s8121_s19 = smov %s6770_s26 }
 0x76b   : > { %s8122_s20 = smov %s6757_s23  ;;  %23 = sbr.rel (!%p21_p5) target bundleno = 3 (0x3), region = 168 }
 0x772   :  { %5161 = vsyncpa [#allocation10], 1 }
 0x773   :  { %5163 = vsyncpa [#allocation10 + $0x1], 1 }

</bundles_post_ra>
